<compile_context>
chip_gen: v7x
topology: tpu7x:2x2x1
jax: 0.10.0
libtpu: 0.0.40
codegen_flags: <defaults>
</compile_context>

<pallas_src>
import math
import numpy as np
import jax
import jax.numpy as jnp
from jax.experimental import pallas as pl
from jax.experimental.pallas import tpu as pltpu  # noqa: F401

# ----------------------------- configuration -------------------------------
B = 2                    # batch
C_IN = 3                 # image channels (CLIP normalize is 3-channel)
IMG = 16                 # image H = W
PATCH = 4                # patch size -> 4x4 = 16 patches
GRID = IMG // PATCH
N_PATCH = GRID * GRID
SEQ = N_PATCH + 1        # +1 cls token
D = 32                   # encoder_hidden_size == perceiver hidden_size
MLP = 4 * D              # 128
NUM_QUERIES = 8          # perceiver_config.num_queries
LLM_HIDDEN = 64          # llm_hidden_size
LN_EPS = 1e-6
CPP = C_IN * PATCH * PATCH          # 48 im2col columns per patch
BS = B * SEQ                        # 34 flattened encoder rows
BQ = B * NUM_QUERIES                # 16 flattened query rows
ATTN_SCALE = 1.0 / math.sqrt(D)
NEG_INF = -1e30

MXU_DTYPE = jnp.bfloat16            # bf16 MXU operands, f32 accumulation

CLIP_MEAN = np.array([0.48145466, 0.4578275, 0.40821073], dtype=np.float32)
CLIP_STD = np.array([0.26862954, 0.26130258, 0.27577711], dtype=np.float32)

# ------------------------- packed-parameter layout --------------------------
# w_slab  : (11, D, 128) bf16 -- every weight with input dim D, one zero-padded
#           128-lane slot each (slices are lane-offset-0 / tile-aligned).
(W_Q, W_K, W_V, W_O, W_FC1, W_POSP,
 W_PQ, W_PK, W_PV, W_PO, W_PROJ) = range(11)
W_LANES = 128

# k_slab  : (CPP + MLP, D) bf16 -- patch embed (normalize-folded) + MLP down-proj.

# f32 slab: (128, D) f32 -- 26 per-D vectors, then batch-tiled positional rows
#           and latents, each section starting at a sublane-aligned row.
(V_LN1G, V_LN1B, V_QB, V_KB, V_VB, V_OB, V_LN2G, V_LN2B, V_FC2B,
 V_LNFG, V_LNFB, V_POSPB, V_POSLNG, V_POSLNB, V_POSTG, V_POSTB,
 V_PLNQG, V_PLNQB, V_PLNKVG, V_PLNKVB,
 V_PQB, V_PKB, V_PVB, V_POB, V_PLNFG, V_PLNFB) = range(26)
N_VEC = 26
ROW_ENCPOS, ROW_SPOS, ROW_LAT, F32_ROWS = 32, 72, 112, 128

# wide slab: (2, 128) f32 -- fc1 bias row, final-proj bias row (zero padded).

# mask slab: (56, BS) f32 -- block-diagonal additive masks (batch isolation).
ROW_PMASK, MASK_ROWS = 40, 56


# ------------------------------- fused kernel ------------------------------
def fused_visual_tokenizer_kernel(patches_ref, wslab_ref, kslab_ref, vslab_ref,
                                  wide_ref, mask_ref, emb_out, vis_out):
    f32 = jnp.float32
    bf16 = MXU_DTYPE

    def vrow(i):                               # (1, D) f32 parameter row
        return vslab_ref[i:i + 1, :]

    def wmat(i, n):                            # (D, n) bf16 weight (lane offset 0)
        return wslab_ref[i, :, :n]

    def mm(x, w, b=None):                      # 2-D (R,K)@(K,N), f32 MXU accumulate
        y = jnp.dot(x.astype(bf16), w, preferred_element_type=f32)
        return y if b is None else y + b

    def ln(x, gi, bi):
        xf = x.astype(f32)
        mu = jnp.mean(xf, axis=-1, keepdims=True)
        var = jnp.mean(jnp.square(xf - mu), axis=-1, keepdims=True)
        return (xf - mu) * jax.lax.rsqrt(var + LN_EPS) * vrow(gi) + vrow(bi)

    def attention(q, k, v, mask):
        # Flat rows x rows attention; cross-batch pairs carry a -1e30 additive
        # mask.  Softmax normalization deferred to after PV (one exact divide
        # per output row -- review correctness note on approx reciprocal).
        qb, kb, vb = q.astype(bf16), k.astype(bf16), v.astype(bf16)
        s = jax.lax.dot_general(qb, kb, (((1,), (1,)), ((), ())),
                                preferred_element_type=f32) * ATTN_SCALE + mask
        m = jnp.max(s, axis=-1, keepdims=True)
        p = jnp.exp(s - m)
        l = jnp.sum(p, axis=-1, keepdims=True)
        a = jnp.dot(p.astype(bf16), vb, preferred_element_type=f32)
        return a * pl.reciprocal(l, approx=False)

    # ----- carve the parameter slabs (static, aligned ref slices) -----
    enc_mask = mask_ref[0:BS, :]                       # (BS, BS)
    prc_mask = mask_ref[ROW_PMASK:ROW_PMASK + BQ, :]   # (BQ, BS)
    patch_w = kslab_ref[0:CPP, :]                      # (CPP, D) bf16
    fc2_w = kslab_ref[CPP:CPP + MLP, :]                # (MLP, D) bf16
    enc_pos = vslab_ref[ROW_ENCPOS:ROW_ENCPOS + BS, :]  # (BS, D) f32
    spos = vslab_ref[ROW_SPOS:ROW_SPOS + BS, :]         # (BS, D) f32
    lat = vslab_ref[ROW_LAT:ROW_LAT + BQ, :]            # (BQ, D) f32
    fc1_b = wide_ref[0:1, :MLP]
    proj_b = wide_ref[1:2, :LLM_HIDDEN]

    # ----- patch embedding (CLIP normalize, patch bias, cls token all folded) -----
    x = mm(patches_ref[...], patch_w) + enc_pos        # (BS, D) f32

    # ----- one pre-LN transformer block (synthetic CLIP-ViT stand-in) -----
    h1 = ln(x, V_LN1G, V_LN1B).astype(bf16)            # cast once, feeds q/k/v
    q = mm(h1, wmat(W_Q, D), vrow(V_QB))
    k = mm(h1, wmat(W_K, D), vrow(V_KB))
    v = mm(h1, wmat(W_V, D), vrow(V_VB))
    x = x + mm(attention(q, k, v, enc_mask), wmat(W_O, D), vrow(V_OB))
    h2 = ln(x, V_LN2G, V_LN2B)
    m1 = jax.nn.gelu(mm(h2, wmat(W_FC1, MLP), fc1_b), approximate=True)
    x = x + mm(m1, fc2_w, vrow(V_FC2B))
    last = ln(x, V_LNFG, V_LNFB)                       # last_hidden_state (BS, D)

    # ----- VisualTokenizer head -----
    emb_out[...] = (last + spos).astype(emb_out.dtype)  # image_embed + pos_embed

    qf = ln(mm(last, wmat(W_POSP, D), vrow(V_POSPB)), V_POSLNG, V_POSLNB) + spos
    qf = ln(qf, V_POSTG, V_POSTB)

    # ----- perceiver resampler (single-head cross-attention stand-in) -----
    q_in = ln(lat, V_PLNQG, V_PLNQB)
    kv = ln(qf, V_PLNKVG, V_PLNKVB).astype(bf16)       # cast once, feeds k and v
    pq = mm(q_in, wmat(W_PQ, D), vrow(V_PQB))
    pk = mm(kv, wmat(W_PK, D), vrow(V_PKB))
    pv = mm(kv, wmat(W_PV, D), vrow(V_PVB))
    z = lat + mm(attention(pq, pk, pv, prc_mask), wmat(W_PO, D), vrow(V_POB))
    z = ln(z, V_PLNFG, V_PLNFB)
    vis = mm(z, wmat(W_PROJ, LLM_HIDDEN), proj_b)      # (BQ, LLM_HIDDEN)
    for b in range(B):                                  # sublane-aligned stores
        vis_out[b, :, :] = vis[b * NUM_QUERIES:(b + 1) * NUM_QUERIES, :]


# -------------------------- sincos pos embedding ---------------------------
def get_1d_sincos_pos_embed_from_grid(embed_dim, pos):
    omega = np.arange(embed_dim // 2, dtype=np.float64)
    omega /= embed_dim / 2.0
    omega = 1.0 / 10000 ** omega
    pos = pos.reshape(-1)
    out = np.einsum("m,d->md", pos, omega)
    return np.concatenate([np.sin(out), np.cos(out)], axis=1)


def get_2d_sincos_pos_embed(embed_dim, grid_size, cls_token=False):
    grid_h = np.arange(grid_size, dtype=np.float32)
    grid_w = np.arange(grid_size, dtype=np.float32)
    grid = np.meshgrid(grid_w, grid_h)
    grid = np.stack(grid, axis=0).reshape([2, 1, grid_size, grid_size])
    emb_h = get_1d_sincos_pos_embed_from_grid(embed_dim // 2, grid[0])
    emb_w = get_1d_sincos_pos_embed_from_grid(embed_dim // 2, grid[1])
    pos_embed = np.concatenate([emb_h, emb_w], axis=1)
    if cls_token:
        pos_embed = np.concatenate([np.zeros([1, embed_dim]), pos_embed], axis=0)
    return pos_embed.astype(np.float32)


def get_abs_pos(abs_pos, tgt_size):
    # TODO(synk): bicubic interpolation when sizes mismatch; identity here.
    assert abs_pos.shape[0] == tgt_size
    return abs_pos


# ----------------------------- parameter init ------------------------------
def init_params(key):
    keys = iter(jax.random.split(key, 40))

    def nrm(shape, std=0.02):
        return std * jax.random.normal(next(keys), shape, dtype=jnp.float32)

    ones = lambda n: jnp.ones((n,), jnp.float32)
    zeros = lambda n: jnp.zeros((n,), jnp.float32)

    p = {}
    # synthetic ViT encoder
    p["patch_w"] = nrm((CPP, D)); p["patch_b"] = zeros(D)
    p["cls_token"] = nrm((D,)); p["enc_pos"] = nrm((SEQ, D))
    p["ln1_g"] = ones(D); p["ln1_b"] = zeros(D)
    p["q_w"] = nrm((D, D)); p["q_b"] = zeros(D)
    p["k_w"] = nrm((D, D)); p["k_b"] = zeros(D)
    p["v_w"] = nrm((D, D)); p["v_b"] = zeros(D)
    p["o_w"] = nrm((D, D)); p["o_b"] = zeros(D)
    p["ln2_g"] = ones(D); p["ln2_b"] = zeros(D)
    p["fc1_w"] = nrm((D, MLP)); p["fc1_b"] = zeros(MLP)
    p["fc2_w"] = nrm((MLP, D)); p["fc2_b"] = zeros(D)
    p["lnf_g"] = ones(D); p["lnf_b"] = zeros(D)
    # VisualTokenizer head
    p["pos_proj_w"] = nrm((D, D)); p["pos_proj_b"] = zeros(D)
    p["pos_ln_g"] = ones(D); p["pos_ln_b"] = zeros(D)
    p["post_ln_g"] = ones(D); p["post_ln_b"] = zeros(D)
    p["pos_embed"] = jnp.asarray(get_2d_sincos_pos_embed(D, GRID, cls_token=True))
    # perceiver resampler (synthetic single-head cross-attention)
    p["latents"] = nrm((NUM_QUERIES, D))
    p["p_lnq_g"] = ones(D); p["p_lnq_b"] = zeros(D)
    p["p_lnkv_g"] = ones(D); p["p_lnkv_b"] = zeros(D)
    p["p_q_w"] = nrm((D, D)); p["p_q_b"] = zeros(D)
    p["p_k_w"] = nrm((D, D)); p["p_k_b"] = zeros(D)
    p["p_v_w"] = nrm((D, D)); p["p_v_b"] = zeros(D)
    p["p_o_w"] = nrm((D, D)); p["p_o_b"] = zeros(D)
    p["p_lnf_g"] = ones(D); p["p_lnf_b"] = zeros(D)
    # final proj: normal(std=0.001), bias 0 (matches initialize_weights)
    p["proj_w"] = nrm((D, LLM_HIDDEN), std=0.001); p["proj_b"] = zeros(LLM_HIDDEN)
    return p


# --------------------- host-side folds + slab packing (once) ----------------
def pack_params(p):
    f32 = jnp.float32

    # fold CLIP normalize into the patch-embedding weight / bias
    inv_std = np.repeat((1.0 / CLIP_STD).astype(np.float32), PATCH * PATCH)  # (CPP,)
    mean = np.repeat(CLIP_MEAN, PATCH * PATCH).astype(np.float32)            # (CPP,)
    patch_w = p["patch_w"].astype(f32)
    patch_w_eff = patch_w * jnp.asarray(inv_std)[:, None]                    # (CPP, D)
    patch_b_eff = p["patch_b"] - jnp.asarray(mean * inv_std) @ patch_w       # (D,)

    # fold the patch bias + cls token into a batch-tiled encoder pos embedding
    # (row 0 of each image is a zero dummy patch -> contributes nothing via W')
    enc_pos = p["enc_pos"] + patch_b_eff[None, :]
    enc_pos = enc_pos.at[0].set(p["cls_token"] + p["enc_pos"][0])
    enc_pos_t = jnp.tile(enc_pos, (B, 1))                                    # (BS, D)
    spos_t = jnp.tile(get_abs_pos(p["pos_embed"], SEQ), (B, 1))              # (BS, D)
    lat_t = jnp.tile(p["latents"], (B, 1))                                   # (BQ, D)

    # f32 slab: 26 per-D vectors + tiled positional rows + latents
    vec_rows = jnp.stack([
        p["ln1_g"], p["ln1_b"], p["q_b"], p["k_b"], p["v_b"], p["o_b"],
        p["ln2_g"], p["ln2_b"], p["fc2_b"], p["lnf_g"], p["lnf_b"],
        p["pos_proj_b"], p["pos_ln_g"], p["pos_ln_b"], p["post_ln_g"], p["post_ln_b"],
        p["p_lnq_g"], p["p_lnq_b"], p["p_lnkv_g"], p["p_lnkv_b"],
        p["p_q_b"], p["p_k_b"], p["p_v_b"], p["p_o_b"], p["p_lnf_g"], p["p_lnf_b"],
    ], axis=0).astype(f32)                                                   # (26, D)
    f32_slab = jnp.zeros((F32_ROWS, D), f32)
    f32_slab = f32_slab.at[0:N_VEC].set(vec_rows)
    f32_slab = f32_slab.at[ROW_ENCPOS:ROW_ENCPOS + BS].set(enc_pos_t)
    f32_slab = f32_slab.at[ROW_SPOS:ROW_SPOS + BS].set(spos_t)
    f32_slab = f32_slab.at[ROW_LAT:ROW_LAT + BQ].set(lat_t)

    # bf16 weight slab: every D-input weight in its own zero-padded 128-lane slot
    def pad_lanes(w):
        return jnp.pad(w.astype(f32), ((0, 0), (0, W_LANES - w.shape[1])))
    w_slab = jnp.stack(
        [pad_lanes(p[k]) for k in ("q_w", "k_w", "v_w", "o_w", "fc1_w",
                                   "pos_proj_w", "p_q_w", "p_k_w", "p_v_w",
                                   "p_o_w", "proj_w")],
        axis=0).astype(MXU_DTYPE)                                            # (11, D, 128)

    # bf16 slab for the two weights whose input dim != D
    k_slab = jnp.concatenate([patch_w_eff, p["fc2_w"].astype(f32)],
                             axis=0).astype(MXU_DTYPE)                       # (CPP+MLP, D)

    # wide (128-lane) f32 bias rows
    wide = jnp.zeros((2, W_LANES), f32)
    wide = wide.at[0, :MLP].set(p["fc1_b"])
    wide = wide.at[1, :LLM_HIDDEN].set(p["proj_b"])

    # block-diagonal additive attention masks (per-image isolation of the
    # flattened-row attention)
    rb = np.arange(BS) // SEQ
    qb = np.arange(BQ) // NUM_QUERIES
    enc_mask = np.where(rb[:, None] == rb[None, :], 0.0, NEG_INF).astype(np.float32)
    prc_mask = np.where(qb[:, None] == rb[None, :], 0.0, NEG_INF).astype(np.float32)
    mask_slab = np.zeros((MASK_ROWS, BS), np.float32)
    mask_slab[0:BS] = enc_mask
    mask_slab[ROW_PMASK:ROW_PMASK + BQ] = prc_mask

    return dict(w_slab=w_slab, k_slab=k_slab, f32_slab=f32_slab,
                wide=wide, mask=jnp.asarray(mask_slab))


# ------------------------------- forward pass -------------------------------
def patchify(image, patch):
    Bn, Cn, H, W = image.shape
    h, w = H // patch, W // patch
    x = image.reshape(Bn, Cn, h, patch, w, patch)
    x = x.transpose(0, 2, 4, 1, 3, 5)             # B, h, w, C, ph, pw
    return x.reshape(Bn, h * w, Cn * patch * patch), h, w


def visual_tokenizer_forward(packed, image):
    Bn = image.shape[0]
    # TODO(synk): im2col kept as one tiny host-side XLA op (6-D transpose has no
    # clean in-kernel Mosaic lowering); everything downstream is one pallas_call.
    patches, h, w = patchify(image, PATCH)
    # dummy zero row at position 0 of each image stands in for the cls slot; the
    # (folded) cls token lives in the packed positional rows.
    patches = jnp.concatenate(
        [jnp.zeros((Bn, 1, CPP), patches.dtype), patches], axis=1)
    patches = patches.reshape(Bn * SEQ, CPP)

    emb_flat, vis_embed = pl.pallas_call(
        fused_visual_tokenizer_kernel,
        out_shape=(jax.ShapeDtypeStruct((Bn * SEQ, D), jnp.float32),
                   jax.ShapeDtypeStruct((Bn, NUM_QUERIES, LLM_HIDDEN), jnp.float32)),
    )(patches, packed["w_slab"], packed["k_slab"], packed["f32_slab"],
      packed["wide"], packed["mask"])

    # cls slice + multiscale rearrangement fuse into one post-kernel XLA fusion.
    emb = emb_flat.reshape(Bn, SEQ, D)
    image_embeds = emb[:, 1:, :]                            # (B, N, D)
    # TODO(synk): synthetic encoder's single multiscale feature map equals the
    # last_hidden_state patch tokens; after the sincos-pos add it equals
    # image_embeds, so only a layout rearrangement remains.
    ms = jnp.transpose(image_embeds, (0, 2, 1)).reshape(Bn, D, h, w)
    return dict(vis_embed=vis_embed,
                image_embeds=image_embeds,
                multiscale_features=[ms])


# --------------------------------- main -------------------------------------
if __name__ == "__main__":
    key = jax.random.PRNGKey(0)
    raw_params = init_params(key)
    packed = pack_params(raw_params)
    image = jax.random.uniform(jax.random.fold_in(key, 123),
                               (B, C_IN, IMG, IMG), dtype=jnp.float32)

    forward = jax.jit(visual_tokenizer_forward)
    out = forward(packed, image)
    jax.block_until_ready(out)

    assert out["vis_embed"].shape == (B, NUM_QUERIES, LLM_HIDDEN)
    assert out["image_embeds"].shape == (B, N_PATCH, D)
    assert out["multiscale_features"][0].shape == (B, D, GRID, GRID)
    assert bool(jnp.isfinite(out["vis_embed"]).all())
    assert bool(jnp.isfinite(out["image_embeds"]).all())
    assert bool(jnp.isfinite(out["multiscale_features"][0]).all())
    print("KERNEL_OK")
</pallas_src>

<mosaic_0001>
module attributes {stable_mosaic.version = 11 : i64} {
  func.func @fused_visual_tokenizer_kernel(%arg0: memref<34x48xf32, #tpu.memory_space<vmem>>, %arg1: memref<11x32x128xbf16, #tpu.memory_space<vmem>>, %arg2: memref<176x32xbf16, #tpu.memory_space<vmem>>, %arg3: memref<128x32xf32, #tpu.memory_space<vmem>>, %arg4: memref<2x128xf32, #tpu.memory_space<vmem>>, %arg5: memref<56x34xf32, #tpu.memory_space<vmem>>, %arg6: memref<34x32xf32, #tpu.memory_space<vmem>>, %arg7: memref<2x8x64xf32, #tpu.memory_space<vmem>>) attributes {dimension_semantics = [], scalar_prefetch = 0 : i64, scratch_operands = 0 : i64, tpu.core_type = #tpu.core_type<tc>} {
    %c0 = arith.constant 0 : index
    %c0_0 = arith.constant 0 : index
    %0 = vector.load %arg5[%c0, %c0_0] : memref<56x34xf32, #tpu.memory_space<vmem>>, vector<34x34xf32>
    %c40 = arith.constant 40 : index
    %c0_1 = arith.constant 0 : index
    %1 = vector.load %arg5[%c40, %c0_1] : memref<56x34xf32, #tpu.memory_space<vmem>>, vector<16x34xf32>
    %c0_2 = arith.constant 0 : index
    %c0_3 = arith.constant 0 : index
    %2 = vector.load %arg2[%c0_2, %c0_3] : memref<176x32xbf16, #tpu.memory_space<vmem>>, vector<48x32xbf16>
    %c48 = arith.constant 48 : index
    %c0_4 = arith.constant 0 : index
    %3 = vector.load %arg2[%c48, %c0_4] : memref<176x32xbf16, #tpu.memory_space<vmem>>, vector<128x32xbf16>
    %c32 = arith.constant 32 : index
    %c0_5 = arith.constant 0 : index
    %4 = vector.load %arg3[%c32, %c0_5] : memref<128x32xf32, #tpu.memory_space<vmem>>, vector<34x32xf32>
    %c72 = arith.constant 72 : index
    %c0_6 = arith.constant 0 : index
    %5 = vector.load %arg3[%c72, %c0_6] : memref<128x32xf32, #tpu.memory_space<vmem>>, vector<34x32xf32>
    %c112 = arith.constant 112 : index
    %c0_7 = arith.constant 0 : index
    %6 = vector.load %arg3[%c112, %c0_7] : memref<128x32xf32, #tpu.memory_space<vmem>>, vector<16x32xf32>
    %c0_8 = arith.constant 0 : index
    %c0_9 = arith.constant 0 : index
    %7 = vector.load %arg4[%c0_8, %c0_9] : memref<2x128xf32, #tpu.memory_space<vmem>>, vector<1x128xf32>
    %c1 = arith.constant 1 : index
    %c0_10 = arith.constant 0 : index
    %8 = vector.load %arg4[%c1, %c0_10] : memref<2x128xf32, #tpu.memory_space<vmem>>, vector<1x64xf32>
    %c0_11 = arith.constant 0 : index
    %c0_12 = arith.constant 0 : index
    %9 = vector.load %arg0[%c0_11, %c0_12] : memref<34x48xf32, #tpu.memory_space<vmem>>, vector<34x48xf32>
    %10 = arith.truncf %9 : vector<34x48xf32> to vector<34x48xbf16>
    %cst = arith.constant dense<0.000000e+00> : vector<34x32xf32>
    %11 = tpu.matmul %10, %2, %cst {dimension_numbers = #tpu.dot_dimension_numbers<[1], [0], [0], [1], [0, 0, 1, 1], [], []>} : vector<34x48xbf16>, vector<48x32xbf16>, vector<34x32xf32> -> vector<34x32xf32>
    %12 = arith.addf %11, %4 : vector<34x32xf32>
    %cst_13 = arith.constant dense<0.000000e+00> : vector<34xf32>
    %13 = vector.multi_reduction <add>, %12, %cst_13 [1] : vector<34x32xf32> to vector<34xf32>
    %14 = vector.shape_cast %13 : vector<34xf32> to vector<34x1xf32>
    %cst_14 = arith.constant 3.200000e+01 : f32
    %15 = vector.broadcast %cst_14 : f32 to vector<34x1xf32>
    %16 = arith.divf %14, %15 : vector<34x1xf32>
    %17 = vector.broadcast %16 : vector<34x1xf32> to vector<34x32xf32>
    %18 = arith.subf %12, %17 : vector<34x32xf32>
    %19 = arith.mulf %18, %18 : vector<34x32xf32>
    %cst_15 = arith.constant dense<0.000000e+00> : vector<34xf32>
    %20 = vector.multi_reduction <add>, %19, %cst_15 [1] : vector<34x32xf32> to vector<34xf32>
    %21 = vector.shape_cast %20 : vector<34xf32> to vector<34x1xf32>
    %cst_16 = arith.constant 3.200000e+01 : f32
    %22 = vector.broadcast %cst_16 : f32 to vector<34x1xf32>
    %23 = arith.divf %21, %22 : vector<34x1xf32>
    %24 = vector.broadcast %16 : vector<34x1xf32> to vector<34x32xf32>
    %25 = arith.subf %12, %24 : vector<34x32xf32>
    %cst_17 = arith.constant 9.99999997E-7 : f32
    %26 = vector.broadcast %cst_17 : f32 to vector<34x1xf32>
    %27 = arith.addf %23, %26 : vector<34x1xf32>
    %28 = math.rsqrt %27 : vector<34x1xf32>
    %29 = vector.broadcast %28 : vector<34x1xf32> to vector<34x32xf32>
    %30 = arith.mulf %25, %29 : vector<34x32xf32>
    %c0_18 = arith.constant 0 : index
    %c0_19 = arith.constant 0 : index
    %31 = vector.load %arg3[%c0_18, %c0_19] : memref<128x32xf32, #tpu.memory_space<vmem>>, vector<1x32xf32>
    %32 = vector.broadcast %31 : vector<1x32xf32> to vector<34x32xf32>
    %33 = arith.mulf %30, %32 : vector<34x32xf32>
    %c1_20 = arith.constant 1 : index
    %c0_21 = arith.constant 0 : index
    %34 = vector.load %arg3[%c1_20, %c0_21] : memref<128x32xf32, #tpu.memory_space<vmem>>, vector<1x32xf32>
    %35 = vector.broadcast %34 : vector<1x32xf32> to vector<34x32xf32>
    %36 = arith.addf %33, %35 : vector<34x32xf32>
    %37 = arith.truncf %36 : vector<34x32xf32> to vector<34x32xbf16>
    %c0_22 = arith.constant 0 : index
    %c0_23 = arith.constant 0 : index
    %c0_24 = arith.constant 0 : index
    %38 = vector.load %arg1[%c0_22, %c0_23, %c0_24] : memref<11x32x128xbf16, #tpu.memory_space<vmem>>, vector<1x32x32xbf16>
    %39 = vector.shape_cast %38 : vector<1x32x32xbf16> to vector<32x32xbf16>
    %c2 = arith.constant 2 : index
    %c0_25 = arith.constant 0 : index
    %40 = vector.load %arg3[%c2, %c0_25] : memref<128x32xf32, #tpu.memory_space<vmem>>, vector<1x32xf32>
    %cst_26 = arith.constant dense<0.000000e+00> : vector<34x32xf32>
    %41 = tpu.matmul %37, %39, %cst_26 {dimension_numbers = #tpu.dot_dimension_numbers<[1], [0], [0], [1], [0, 0, 1, 1], [], []>} : vector<34x32xbf16>, vector<32x32xbf16>, vector<34x32xf32> -> vector<34x32xf32>
    %42 = vector.broadcast %40 : vector<1x32xf32> to vector<34x32xf32>
    %43 = arith.addf %41, %42 : vector<34x32xf32>
    %c1_27 = arith.constant 1 : index
    %c0_28 = arith.constant 0 : index
    %c0_29 = arith.constant 0 : index
    %44 = vector.load %arg1[%c1_27, %c0_28, %c0_29] : memref<11x32x128xbf16, #tpu.memory_space<vmem>>, vector<1x32x32xbf16>
    %45 = vector.shape_cast %44 : vector<1x32x32xbf16> to vector<32x32xbf16>
    %c3 = arith.constant 3 : index
    %c0_30 = arith.constant 0 : index
    %46 = vector.load %arg3[%c3, %c0_30] : memref<128x32xf32, #tpu.memory_space<vmem>>, vector<1x32xf32>
    %cst_31 = arith.constant dense<0.000000e+00> : vector<34x32xf32>
    %47 = tpu.matmul %37, %45, %cst_31 {dimension_numbers = #tpu.dot_dimension_numbers<[1], [0], [0], [1], [0, 0, 1, 1], [], []>} : vector<34x32xbf16>, vector<32x32xbf16>, vector<34x32xf32> -> vector<34x32xf32>
    %48 = vector.broadcast %46 : vector<1x32xf32> to vector<34x32xf32>
    %49 = arith.addf %47, %48 : vector<34x32xf32>
    %c2_32 = arith.constant 2 : index
    %c0_33 = arith.constant 0 : index
    %c0_34 = arith.constant 0 : index
    %50 = vector.load %arg1[%c2_32, %c0_33, %c0_34] : memref<11x32x128xbf16, #tpu.memory_space<vmem>>, vector<1x32x32xbf16>
    %51 = vector.shape_cast %50 : vector<1x32x32xbf16> to vector<32x32xbf16>
    %c4 = arith.constant 4 : index
    %c0_35 = arith.constant 0 : index
    %52 = vector.load %arg3[%c4, %c0_35] : memref<128x32xf32, #tpu.memory_space<vmem>>, vector<1x32xf32>
    %cst_36 = arith.constant dense<0.000000e+00> : vector<34x32xf32>
    %53 = tpu.matmul %37, %51, %cst_36 {dimension_numbers = #tpu.dot_dimension_numbers<[1], [0], [0], [1], [0, 0, 1, 1], [], []>} : vector<34x32xbf16>, vector<32x32xbf16>, vector<34x32xf32> -> vector<34x32xf32>
    %54 = vector.broadcast %52 : vector<1x32xf32> to vector<34x32xf32>
    %55 = arith.addf %53, %54 : vector<34x32xf32>
    %56 = arith.truncf %43 : vector<34x32xf32> to vector<34x32xbf16>
    %57 = arith.truncf %49 : vector<34x32xf32> to vector<34x32xbf16>
    %58 = arith.truncf %55 : vector<34x32xf32> to vector<34x32xbf16>
    %cst_37 = arith.constant dense<0.000000e+00> : vector<34x34xf32>
    %59 = tpu.matmul %56, %57, %cst_37 {dimension_numbers = #tpu.dot_dimension_numbers<[1], [1], [0], [0], [0, 0, 1, 0], [], []>} : vector<34x32xbf16>, vector<34x32xbf16>, vector<34x34xf32> -> vector<34x34xf32>
    %cst_38 = arith.constant 0.176776692 : f32
    %60 = vector.broadcast %cst_38 : f32 to vector<34x34xf32>
    %61 = arith.mulf %59, %60 : vector<34x34xf32>
    %62 = arith.addf %61, %0 : vector<34x34xf32>
    %cst_39 = arith.constant dense<0xFF800000> : vector<34xf32>
    %63 = vector.multi_reduction <maximumf>, %62, %cst_39 [1] : vector<34x34xf32> to vector<34xf32>
    %64 = vector.shape_cast %63 : vector<34xf32> to vector<34x1xf32>
    %65 = vector.broadcast %64 : vector<34x1xf32> to vector<34x34xf32>
    %66 = arith.subf %62, %65 : vector<34x34xf32>
    %67 = math.exp %66 : vector<34x34xf32>
    %cst_40 = arith.constant dense<0.000000e+00> : vector<34xf32>
    %68 = vector.multi_reduction <add>, %67, %cst_40 [1] : vector<34x34xf32> to vector<34xf32>
    %69 = vector.shape_cast %68 : vector<34xf32> to vector<34x1xf32>
    %70 = arith.truncf %67 : vector<34x34xf32> to vector<34x34xbf16>
    %cst_41 = arith.constant dense<0.000000e+00> : vector<34x32xf32>
    %71 = tpu.matmul %70, %58, %cst_41 {dimension_numbers = #tpu.dot_dimension_numbers<[1], [0], [0], [1], [0, 0, 1, 1], [], []>} : vector<34x34xbf16>, vector<34x32xbf16>, vector<34x32xf32> -> vector<34x32xf32>
    %72 = tpu.reciprocal %69 : vector<34x1xf32> -> vector<34x1xf32>
    %73 = vector.broadcast %72 : vector<34x1xf32> to vector<34x32xf32>
    %74 = arith.mulf %71, %73 : vector<34x32xf32>
    %c3_42 = arith.constant 3 : index
    %c0_43 = arith.constant 0 : index
    %c0_44 = arith.constant 0 : index
    %75 = vector.load %arg1[%c3_42, %c0_43, %c0_44] : memref<11x32x128xbf16, #tpu.memory_space<vmem>>, vector<1x32x32xbf16>
    %76 = vector.shape_cast %75 : vector<1x32x32xbf16> to vector<32x32xbf16>
    %c5 = arith.constant 5 : index
    %c0_45 = arith.constant 0 : index
    %77 = vector.load %arg3[%c5, %c0_45] : memref<128x32xf32, #tpu.memory_space<vmem>>, vector<1x32xf32>
    %78 = arith.truncf %74 : vector<34x32xf32> to vector<34x32xbf16>
    %cst_46 = arith.constant dense<0.000000e+00> : vector<34x32xf32>
    %79 = tpu.matmul %78, %76, %cst_46 {dimension_numbers = #tpu.dot_dimension_numbers<[1], [0], [0], [1], [0, 0, 1, 1], [], []>} : vector<34x32xbf16>, vector<32x32xbf16>, vector<34x32xf32> -> vector<34x32xf32>
    %80 = vector.broadcast %77 : vector<1x32xf32> to vector<34x32xf32>
    %81 = arith.addf %79, %80 : vector<34x32xf32>
    %82 = arith.addf %12, %81 : vector<34x32xf32>
    %cst_47 = arith.constant dense<0.000000e+00> : vector<34xf32>
    %83 = vector.multi_reduction <add>, %82, %cst_47 [1] : vector<34x32xf32> to vector<34xf32>
    %84 = vector.shape_cast %83 : vector<34xf32> to vector<34x1xf32>
    %cst_48 = arith.constant 3.200000e+01 : f32
    %85 = vector.broadcast %cst_48 : f32 to vector<34x1xf32>
    %86 = arith.divf %84, %85 : vector<34x1xf32>
    %87 = vector.broadcast %86 : vector<34x1xf32> to vector<34x32xf32>
    %88 = arith.subf %82, %87 : vector<34x32xf32>
    %89 = arith.mulf %88, %88 : vector<34x32xf32>
    %cst_49 = arith.constant dense<0.000000e+00> : vector<34xf32>
    %90 = vector.multi_reduction <add>, %89, %cst_49 [1] : vector<34x32xf32> to vector<34xf32>
    %91 = vector.shape_cast %90 : vector<34xf32> to vector<34x1xf32>
    %cst_50 = arith.constant 3.200000e+01 : f32
    %92 = vector.broadcast %cst_50 : f32 to vector<34x1xf32>
    %93 = arith.divf %91, %92 : vector<34x1xf32>
    %94 = vector.broadcast %86 : vector<34x1xf32> to vector<34x32xf32>
    %95 = arith.subf %82, %94 : vector<34x32xf32>
    %cst_51 = arith.constant 9.99999997E-7 : f32
    %96 = vector.broadcast %cst_51 : f32 to vector<34x1xf32>
    %97 = arith.addf %93, %96 : vector<34x1xf32>
    %98 = math.rsqrt %97 : vector<34x1xf32>
    %99 = vector.broadcast %98 : vector<34x1xf32> to vector<34x32xf32>
    %100 = arith.mulf %95, %99 : vector<34x32xf32>
    %c6 = arith.constant 6 : index
    %c0_52 = arith.constant 0 : index
    %101 = vector.load %arg3[%c6, %c0_52] : memref<128x32xf32, #tpu.memory_space<vmem>>, vector<1x32xf32>
    %102 = vector.broadcast %101 : vector<1x32xf32> to vector<34x32xf32>
    %103 = arith.mulf %100, %102 : vector<34x32xf32>
    %c7 = arith.constant 7 : index
    %c0_53 = arith.constant 0 : index
    %104 = vector.load %arg3[%c7, %c0_53] : memref<128x32xf32, #tpu.memory_space<vmem>>, vector<1x32xf32>
    %105 = vector.broadcast %104 : vector<1x32xf32> to vector<34x32xf32>
    %106 = arith.addf %103, %105 : vector<34x32xf32>
    %c4_54 = arith.constant 4 : index
    %c0_55 = arith.constant 0 : index
    %c0_56 = arith.constant 0 : index
    %107 = vector.load %arg1[%c4_54, %c0_55, %c0_56] : memref<11x32x128xbf16, #tpu.memory_space<vmem>>, vector<1x32x128xbf16>
    %108 = vector.shape_cast %107 : vector<1x32x128xbf16> to vector<32x128xbf16>
    %109 = arith.truncf %106 : vector<34x32xf32> to vector<34x32xbf16>
    %cst_57 = arith.constant dense<0.000000e+00> : vector<34x128xf32>
    %110 = tpu.matmul %109, %108, %cst_57 {dimension_numbers = #tpu.dot_dimension_numbers<[1], [0], [0], [1], [0, 0, 1, 1], [], []>} : vector<34x32xbf16>, vector<32x128xbf16>, vector<34x128xf32> -> vector<34x128xf32>
    %111 = vector.broadcast %7 : vector<1x128xf32> to vector<34x128xf32>
    %112 = arith.addf %110, %111 : vector<34x128xf32>
    %113 = arith.mulf %112, %112 : vector<34x128xf32>
    %114 = arith.mulf %112, %113 : vector<34x128xf32>
    %cst_58 = arith.constant 4.471500e-02 : f32
    %115 = vector.broadcast %cst_58 : f32 to vector<34x128xf32>
    %116 = arith.mulf %115, %114 : vector<34x128xf32>
    %117 = arith.addf %112, %116 : vector<34x128xf32>
    %cst_59 = arith.constant 0.797884583 : f32
    %118 = vector.broadcast %cst_59 : f32 to vector<34x128xf32>
    %119 = arith.mulf %118, %117 : vector<34x128xf32>
    %120 = math.tanh %119 : vector<34x128xf32>
    %cst_60 = arith.constant 1.000000e+00 : f32
    %121 = vector.broadcast %cst_60 : f32 to vector<34x128xf32>
    %122 = arith.addf %121, %120 : vector<34x128xf32>
    %cst_61 = arith.constant 5.000000e-01 : f32
    %123 = vector.broadcast %cst_61 : f32 to vector<34x128xf32>
    %124 = arith.mulf %123, %122 : vector<34x128xf32>
    %125 = arith.mulf %112, %124 : vector<34x128xf32>
    %c8 = arith.constant 8 : index
    %c0_62 = arith.constant 0 : index
    %126 = vector.load %arg3[%c8, %c0_62] : memref<128x32xf32, #tpu.memory_space<vmem>>, vector<1x32xf32>
    %127 = arith.truncf %125 : vector<34x128xf32> to vector<34x128xbf16>
    %cst_63 = arith.constant dense<0.000000e+00> : vector<34x32xf32>
    %128 = tpu.matmul %127, %3, %cst_63 {dimension_numbers = #tpu.dot_dimension_numbers<[1], [0], [0], [1], [0, 0, 1, 1], [], []>} : vector<34x128xbf16>, vector<128x32xbf16>, vector<34x32xf32> -> vector<34x32xf32>
    %129 = vector.broadcast %126 : vector<1x32xf32> to vector<34x32xf32>
    %130 = arith.addf %128, %129 : vector<34x32xf32>
    %131 = arith.addf %82, %130 : vector<34x32xf32>
    %cst_64 = arith.constant dense<0.000000e+00> : vector<34xf32>
    %132 = vector.multi_reduction <add>, %131, %cst_64 [1] : vector<34x32xf32> to vector<34xf32>
    %133 = vector.shape_cast %132 : vector<34xf32> to vector<34x1xf32>
    %cst_65 = arith.constant 3.200000e+01 : f32
    %134 = vector.broadcast %cst_65 : f32 to vector<34x1xf32>
    %135 = arith.divf %133, %134 : vector<34x1xf32>
    %136 = vector.broadcast %135 : vector<34x1xf32> to vector<34x32xf32>
    %137 = arith.subf %131, %136 : vector<34x32xf32>
    %138 = arith.mulf %137, %137 : vector<34x32xf32>
    %cst_66 = arith.constant dense<0.000000e+00> : vector<34xf32>
    %139 = vector.multi_reduction <add>, %138, %cst_66 [1] : vector<34x32xf32> to vector<34xf32>
    %140 = vector.shape_cast %139 : vector<34xf32> to vector<34x1xf32>
    %cst_67 = arith.constant 3.200000e+01 : f32
    %141 = vector.broadcast %cst_67 : f32 to vector<34x1xf32>
    %142 = arith.divf %140, %141 : vector<34x1xf32>
    %143 = vector.broadcast %135 : vector<34x1xf32> to vector<34x32xf32>
    %144 = arith.subf %131, %143 : vector<34x32xf32>
    %cst_68 = arith.constant 9.99999997E-7 : f32
    %145 = vector.broadcast %cst_68 : f32 to vector<34x1xf32>
    %146 = arith.addf %142, %145 : vector<34x1xf32>
    %147 = math.rsqrt %146 : vector<34x1xf32>
    %148 = vector.broadcast %147 : vector<34x1xf32> to vector<34x32xf32>
    %149 = arith.mulf %144, %148 : vector<34x32xf32>
    %c9 = arith.constant 9 : index
    %c0_69 = arith.constant 0 : index
    %150 = vector.load %arg3[%c9, %c0_69] : memref<128x32xf32, #tpu.memory_space<vmem>>, vector<1x32xf32>
    %151 = vector.broadcast %150 : vector<1x32xf32> to vector<34x32xf32>
    %152 = arith.mulf %149, %151 : vector<34x32xf32>
    %c10 = arith.constant 10 : index
    %c0_70 = arith.constant 0 : index
    %153 = vector.load %arg3[%c10, %c0_70] : memref<128x32xf32, #tpu.memory_space<vmem>>, vector<1x32xf32>
    %154 = vector.broadcast %153 : vector<1x32xf32> to vector<34x32xf32>
    %155 = arith.addf %152, %154 : vector<34x32xf32>
    %156 = arith.addf %155, %5 : vector<34x32xf32>
    %c0_71 = arith.constant 0 : index
    %c0_72 = arith.constant 0 : index
    %157 = vector.load %arg6[%c0_71, %c0_72] : memref<34x32xf32, #tpu.memory_space<vmem>>, vector<34x32xf32>
    tpu.vector_store %arg6[%c0_71, %c0_72], %156 {strides = array<i32>} : memref<34x32xf32, #tpu.memory_space<vmem>>, vector<34x32xf32>,
    %c5_73 = arith.constant 5 : index
    %c0_74 = arith.constant 0 : index
    %c0_75 = arith.constant 0 : index
    %158 = vector.load %arg1[%c5_73, %c0_74, %c0_75] : memref<11x32x128xbf16, #tpu.memory_space<vmem>>, vector<1x32x32xbf16>
    %159 = vector.shape_cast %158 : vector<1x32x32xbf16> to vector<32x32xbf16>
    %c11 = arith.constant 11 : index
    %c0_76 = arith.constant 0 : index
    %160 = vector.load %arg3[%c11, %c0_76] : memref<128x32xf32, #tpu.memory_space<vmem>>, vector<1x32xf32>
    %161 = arith.truncf %155 : vector<34x32xf32> to vector<34x32xbf16>
    %cst_77 = arith.constant dense<0.000000e+00> : vector<34x32xf32>
    %162 = tpu.matmul %161, %159, %cst_77 {dimension_numbers = #tpu.dot_dimension_numbers<[1], [0], [0], [1], [0, 0, 1, 1], [], []>} : vector<34x32xbf16>, vector<32x32xbf16>, vector<34x32xf32> -> vector<34x32xf32>
    %163 = vector.broadcast %160 : vector<1x32xf32> to vector<34x32xf32>
    %164 = arith.addf %162, %163 : vector<34x32xf32>
    %cst_78 = arith.constant dense<0.000000e+00> : vector<34xf32>
    %165 = vector.multi_reduction <add>, %164, %cst_78 [1] : vector<34x32xf32> to vector<34xf32>
    %166 = vector.shape_cast %165 : vector<34xf32> to vector<34x1xf32>
    %cst_79 = arith.constant 3.200000e+01 : f32
    %167 = vector.broadcast %cst_79 : f32 to vector<34x1xf32>
    %168 = arith.divf %166, %167 : vector<34x1xf32>
    %169 = vector.broadcast %168 : vector<34x1xf32> to vector<34x32xf32>
    %170 = arith.subf %164, %169 : vector<34x32xf32>
    %171 = arith.mulf %170, %170 : vector<34x32xf32>
    %cst_80 = arith.constant dense<0.000000e+00> : vector<34xf32>
    %172 = vector.multi_reduction <add>, %171, %cst_80 [1] : vector<34x32xf32> to vector<34xf32>
    %173 = vector.shape_cast %172 : vector<34xf32> to vector<34x1xf32>
    %cst_81 = arith.constant 3.200000e+01 : f32
    %174 = vector.broadcast %cst_81 : f32 to vector<34x1xf32>
    %175 = arith.divf %173, %174 : vector<34x1xf32>
    %176 = vector.broadcast %168 : vector<34x1xf32> to vector<34x32xf32>
    %177 = arith.subf %164, %176 : vector<34x32xf32>
    %cst_82 = arith.constant 9.99999997E-7 : f32
    %178 = vector.broadcast %cst_82 : f32 to vector<34x1xf32>
    %179 = arith.addf %175, %178 : vector<34x1xf32>
    %180 = math.rsqrt %179 : vector<34x1xf32>
    %181 = vector.broadcast %180 : vector<34x1xf32> to vector<34x32xf32>
    %182 = arith.mulf %177, %181 : vector<34x32xf32>
    %c12 = arith.constant 12 : index
    %c0_83 = arith.constant 0 : index
    %183 = vector.load %arg3[%c12, %c0_83] : memref<128x32xf32, #tpu.memory_space<vmem>>, vector<1x32xf32>
    %184 = vector.broadcast %183 : vector<1x32xf32> to vector<34x32xf32>
    %185 = arith.mulf %182, %184 : vector<34x32xf32>
    %c13 = arith.constant 13 : index
    %c0_84 = arith.constant 0 : index
    %186 = vector.load %arg3[%c13, %c0_84] : memref<128x32xf32, #tpu.memory_space<vmem>>, vector<1x32xf32>
    %187 = vector.broadcast %186 : vector<1x32xf32> to vector<34x32xf32>
    %188 = arith.addf %185, %187 : vector<34x32xf32>
    %189 = arith.addf %188, %5 : vector<34x32xf32>
    %cst_85 = arith.constant dense<0.000000e+00> : vector<34xf32>
    %190 = vector.multi_reduction <add>, %189, %cst_85 [1] : vector<34x32xf32> to vector<34xf32>
    %191 = vector.shape_cast %190 : vector<34xf32> to vector<34x1xf32>
    %cst_86 = arith.constant 3.200000e+01 : f32
    %192 = vector.broadcast %cst_86 : f32 to vector<34x1xf32>
    %193 = arith.divf %191, %192 : vector<34x1xf32>
    %194 = vector.broadcast %193 : vector<34x1xf32> to vector<34x32xf32>
    %195 = arith.subf %189, %194 : vector<34x32xf32>
    %196 = arith.mulf %195, %195 : vector<34x32xf32>
    %cst_87 = arith.constant dense<0.000000e+00> : vector<34xf32>
    %197 = vector.multi_reduction <add>, %196, %cst_87 [1] : vector<34x32xf32> to vector<34xf32>
    %198 = vector.shape_cast %197 : vector<34xf32> to vector<34x1xf32>
    %cst_88 = arith.constant 3.200000e+01 : f32
    %199 = vector.broadcast %cst_88 : f32 to vector<34x1xf32>
    %200 = arith.divf %198, %199 : vector<34x1xf32>
    %201 = vector.broadcast %193 : vector<34x1xf32> to vector<34x32xf32>
    %202 = arith.subf %189, %201 : vector<34x32xf32>
    %cst_89 = arith.constant 9.99999997E-7 : f32
    %203 = vector.broadcast %cst_89 : f32 to vector<34x1xf32>
    %204 = arith.addf %200, %203 : vector<34x1xf32>
    %205 = math.rsqrt %204 : vector<34x1xf32>
    %206 = vector.broadcast %205 : vector<34x1xf32> to vector<34x32xf32>
    %207 = arith.mulf %202, %206 : vector<34x32xf32>
    %c14 = arith.constant 14 : index
    %c0_90 = arith.constant 0 : index
    %208 = vector.load %arg3[%c14, %c0_90] : memref<128x32xf32, #tpu.memory_space<vmem>>, vector<1x32xf32>
    %209 = vector.broadcast %208 : vector<1x32xf32> to vector<34x32xf32>
    %210 = arith.mulf %207, %209 : vector<34x32xf32>
    %c15 = arith.constant 15 : index
    %c0_91 = arith.constant 0 : index
    %211 = vector.load %arg3[%c15, %c0_91] : memref<128x32xf32, #tpu.memory_space<vmem>>, vector<1x32xf32>
    %212 = vector.broadcast %211 : vector<1x32xf32> to vector<34x32xf32>
    %213 = arith.addf %210, %212 : vector<34x32xf32>
    %cst_92 = arith.constant dense<0.000000e+00> : vector<16xf32>
    %214 = vector.multi_reduction <add>, %6, %cst_92 [1] : vector<16x32xf32> to vector<16xf32>
    %215 = vector.shape_cast %214 : vector<16xf32> to vector<16x1xf32>
    %cst_93 = arith.constant 3.200000e+01 : f32
    %216 = vector.broadcast %cst_93 : f32 to vector<16x1xf32>
    %217 = arith.divf %215, %216 : vector<16x1xf32>
    %218 = vector.broadcast %217 : vector<16x1xf32> to vector<16x32xf32>
    %219 = arith.subf %6, %218 : vector<16x32xf32>
    %220 = arith.mulf %219, %219 : vector<16x32xf32>
    %cst_94 = arith.constant dense<0.000000e+00> : vector<16xf32>
    %221 = vector.multi_reduction <add>, %220, %cst_94 [1] : vector<16x32xf32> to vector<16xf32>
    %222 = vector.shape_cast %221 : vector<16xf32> to vector<16x1xf32>
    %cst_95 = arith.constant 3.200000e+01 : f32
    %223 = vector.broadcast %cst_95 : f32 to vector<16x1xf32>
    %224 = arith.divf %222, %223 : vector<16x1xf32>
    %225 = vector.broadcast %217 : vector<16x1xf32> to vector<16x32xf32>
    %226 = arith.subf %6, %225 : vector<16x32xf32>
    %cst_96 = arith.constant 9.99999997E-7 : f32
    %227 = vector.broadcast %cst_96 : f32 to vector<16x1xf32>
    %228 = arith.addf %224, %227 : vector<16x1xf32>
    %229 = math.rsqrt %228 : vector<16x1xf32>
    %230 = vector.broadcast %229 : vector<16x1xf32> to vector<16x32xf32>
    %231 = arith.mulf %226, %230 : vector<16x32xf32>
    %c16 = arith.constant 16 : index
    %c0_97 = arith.constant 0 : index
    %232 = vector.load %arg3[%c16, %c0_97] : memref<128x32xf32, #tpu.memory_space<vmem>>, vector<1x32xf32>
    %233 = vector.broadcast %232 : vector<1x32xf32> to vector<16x32xf32>
    %234 = arith.mulf %231, %233 : vector<16x32xf32>
    %c17 = arith.constant 17 : index
    %c0_98 = arith.constant 0 : index
    %235 = vector.load %arg3[%c17, %c0_98] : memref<128x32xf32, #tpu.memory_space<vmem>>, vector<1x32xf32>
    %236 = vector.broadcast %235 : vector<1x32xf32> to vector<16x32xf32>
    %237 = arith.addf %234, %236 : vector<16x32xf32>
    %cst_99 = arith.constant dense<0.000000e+00> : vector<34xf32>
    %238 = vector.multi_reduction <add>, %213, %cst_99 [1] : vector<34x32xf32> to vector<34xf32>
    %239 = vector.shape_cast %238 : vector<34xf32> to vector<34x1xf32>
    %cst_100 = arith.constant 3.200000e+01 : f32
    %240 = vector.broadcast %cst_100 : f32 to vector<34x1xf32>
    %241 = arith.divf %239, %240 : vector<34x1xf32>
    %242 = vector.broadcast %241 : vector<34x1xf32> to vector<34x32xf32>
    %243 = arith.subf %213, %242 : vector<34x32xf32>
    %244 = arith.mulf %243, %243 : vector<34x32xf32>
    %cst_101 = arith.constant dense<0.000000e+00> : vector<34xf32>
    %245 = vector.multi_reduction <add>, %244, %cst_101 [1] : vector<34x32xf32> to vector<34xf32>
    %246 = vector.shape_cast %245 : vector<34xf32> to vector<34x1xf32>
    %cst_102 = arith.constant 3.200000e+01 : f32
    %247 = vector.broadcast %cst_102 : f32 to vector<34x1xf32>
    %248 = arith.divf %246, %247 : vector<34x1xf32>
    %249 = vector.broadcast %241 : vector<34x1xf32> to vector<34x32xf32>
    %250 = arith.subf %213, %249 : vector<34x32xf32>
    %cst_103 = arith.constant 9.99999997E-7 : f32
    %251 = vector.broadcast %cst_103 : f32 to vector<34x1xf32>
    %252 = arith.addf %248, %251 : vector<34x1xf32>
    %253 = math.rsqrt %252 : vector<34x1xf32>
    %254 = vector.broadcast %253 : vector<34x1xf32> to vector<34x32xf32>
    %255 = arith.mulf %250, %254 : vector<34x32xf32>
    %c18 = arith.constant 18 : index
    %c0_104 = arith.constant 0 : index
    %256 = vector.load %arg3[%c18, %c0_104] : memref<128x32xf32, #tpu.memory_space<vmem>>, vector<1x32xf32>
    %257 = vector.broadcast %256 : vector<1x32xf32> to vector<34x32xf32>
    %258 = arith.mulf %255, %257 : vector<34x32xf32>
    %c19 = arith.constant 19 : index
    %c0_105 = arith.constant 0 : index
    %259 = vector.load %arg3[%c19, %c0_105] : memref<128x32xf32, #tpu.memory_space<vmem>>, vector<1x32xf32>
    %260 = vector.broadcast %259 : vector<1x32xf32> to vector<34x32xf32>
    %261 = arith.addf %258, %260 : vector<34x32xf32>
    %262 = arith.truncf %261 : vector<34x32xf32> to vector<34x32xbf16>
    %c6_106 = arith.constant 6 : index
    %c0_107 = arith.constant 0 : index
    %c0_108 = arith.constant 0 : index
    %263 = vector.load %arg1[%c6_106, %c0_107, %c0_108] : memref<11x32x128xbf16, #tpu.memory_space<vmem>>, vector<1x32x32xbf16>
    %264 = vector.shape_cast %263 : vector<1x32x32xbf16> to vector<32x32xbf16>
    %c20 = arith.constant 20 : index
    %c0_109 = arith.constant 0 : index
    %265 = vector.load %arg3[%c20, %c0_109] : memref<128x32xf32, #tpu.memory_space<vmem>>, vector<1x32xf32>
    %266 = arith.truncf %237 : vector<16x32xf32> to vector<16x32xbf16>
    %cst_110 = arith.constant dense<0.000000e+00> : vector<16x32xf32>
    %267 = tpu.matmul %266, %264, %cst_110 {dimension_numbers = #tpu.dot_dimension_numbers<[1], [0], [0], [1], [0, 0, 1, 1], [], []>} : vector<16x32xbf16>, vector<32x32xbf16>, vector<16x32xf32> -> vector<16x32xf32>
    %268 = vector.broadcast %265 : vector<1x32xf32> to vector<16x32xf32>
    %269 = arith.addf %267, %268 : vector<16x32xf32>
    %c7_111 = arith.constant 7 : index
    %c0_112 = arith.constant 0 : index
    %c0_113 = arith.constant 0 : index
    %270 = vector.load %arg1[%c7_111, %c0_112, %c0_113] : memref<11x32x128xbf16, #tpu.memory_space<vmem>>, vector<1x32x32xbf16>
    %271 = vector.shape_cast %270 : vector<1x32x32xbf16> to vector<32x32xbf16>
    %c21 = arith.constant 21 : index
    %c0_114 = arith.constant 0 : index
    %272 = vector.load %arg3[%c21, %c0_114] : memref<128x32xf32, #tpu.memory_space<vmem>>, vector<1x32xf32>
    %cst_115 = arith.constant dense<0.000000e+00> : vector<34x32xf32>
    %273 = tpu.matmul %262, %271, %cst_115 {dimension_numbers = #tpu.dot_dimension_numbers<[1], [0], [0], [1], [0, 0, 1, 1], [], []>} : vector<34x32xbf16>, vector<32x32xbf16>, vector<34x32xf32> -> vector<34x32xf32>
    %274 = vector.broadcast %272 : vector<1x32xf32> to vector<34x32xf32>
    %275 = arith.addf %273, %274 : vector<34x32xf32>
    %c8_116 = arith.constant 8 : index
    %c0_117 = arith.constant 0 : index
    %c0_118 = arith.constant 0 : index
    %276 = vector.load %arg1[%c8_116, %c0_117, %c0_118] : memref<11x32x128xbf16, #tpu.memory_space<vmem>>, vector<1x32x32xbf16>
    %277 = vector.shape_cast %276 : vector<1x32x32xbf16> to vector<32x32xbf16>
    %c22 = arith.constant 22 : index
    %c0_119 = arith.constant 0 : index
    %278 = vector.load %arg3[%c22, %c0_119] : memref<128x32xf32, #tpu.memory_space<vmem>>, vector<1x32xf32>
    %cst_120 = arith.constant dense<0.000000e+00> : vector<34x32xf32>
    %279 = tpu.matmul %262, %277, %cst_120 {dimension_numbers = #tpu.dot_dimension_numbers<[1], [0], [0], [1], [0, 0, 1, 1], [], []>} : vector<34x32xbf16>, vector<32x32xbf16>, vector<34x32xf32> -> vector<34x32xf32>
    %280 = vector.broadcast %278 : vector<1x32xf32> to vector<34x32xf32>
    %281 = arith.addf %279, %280 : vector<34x32xf32>
    %282 = arith.truncf %269 : vector<16x32xf32> to vector<16x32xbf16>
    %283 = arith.truncf %275 : vector<34x32xf32> to vector<34x32xbf16>
    %284 = arith.truncf %281 : vector<34x32xf32> to vector<34x32xbf16>
    %cst_121 = arith.constant dense<0.000000e+00> : vector<16x34xf32>
    %285 = tpu.matmul %282, %283, %cst_121 {dimension_numbers = #tpu.dot_dimension_numbers<[1], [1], [0], [0], [0, 0, 1, 0], [], []>} : vector<16x32xbf16>, vector<34x32xbf16>, vector<16x34xf32> -> vector<16x34xf32>
    %cst_122 = arith.constant 0.176776692 : f32
    %286 = vector.broadcast %cst_122 : f32 to vector<16x34xf32>
    %287 = arith.mulf %285, %286 : vector<16x34xf32>
    %288 = arith.addf %287, %1 : vector<16x34xf32>
    %cst_123 = arith.constant dense<0xFF800000> : vector<16xf32>
    %289 = vector.multi_reduction <maximumf>, %288, %cst_123 [1] : vector<16x34xf32> to vector<16xf32>
    %290 = vector.shape_cast %289 : vector<16xf32> to vector<16x1xf32>
    %291 = vector.broadcast %290 : vector<16x1xf32> to vector<16x34xf32>
    %292 = arith.subf %288, %291 : vector<16x34xf32>
    %293 = math.exp %292 : vector<16x34xf32>
    %cst_124 = arith.constant dense<0.000000e+00> : vector<16xf32>
    %294 = vector.multi_reduction <add>, %293, %cst_124 [1] : vector<16x34xf32> to vector<16xf32>
    %295 = vector.shape_cast %294 : vector<16xf32> to vector<16x1xf32>
    %296 = arith.truncf %293 : vector<16x34xf32> to vector<16x34xbf16>
    %cst_125 = arith.constant dense<0.000000e+00> : vector<16x32xf32>
    %297 = tpu.matmul %296, %284, %cst_125 {dimension_numbers = #tpu.dot_dimension_numbers<[1], [0], [0], [1], [0, 0, 1, 1], [], []>} : vector<16x34xbf16>, vector<34x32xbf16>, vector<16x32xf32> -> vector<16x32xf32>
    %298 = tpu.reciprocal %295 : vector<16x1xf32> -> vector<16x1xf32>
    %299 = vector.broadcast %298 : vector<16x1xf32> to vector<16x32xf32>
    %300 = arith.mulf %297, %299 : vector<16x32xf32>
    %c9_126 = arith.constant 9 : index
    %c0_127 = arith.constant 0 : index
    %c0_128 = arith.constant 0 : index
    %301 = vector.load %arg1[%c9_126, %c0_127, %c0_128] : memref<11x32x128xbf16, #tpu.memory_space<vmem>>, vector<1x32x32xbf16>
    %302 = vector.shape_cast %301 : vector<1x32x32xbf16> to vector<32x32xbf16>
    %c23 = arith.constant 23 : index
    %c0_129 = arith.constant 0 : index
    %303 = vector.load %arg3[%c23, %c0_129] : memref<128x32xf32, #tpu.memory_space<vmem>>, vector<1x32xf32>
    %304 = arith.truncf %300 : vector<16x32xf32> to vector<16x32xbf16>
    %cst_130 = arith.constant dense<0.000000e+00> : vector<16x32xf32>
    %305 = tpu.matmul %304, %302, %cst_130 {dimension_numbers = #tpu.dot_dimension_numbers<[1], [0], [0], [1], [0, 0, 1, 1], [], []>} : vector<16x32xbf16>, vector<32x32xbf16>, vector<16x32xf32> -> vector<16x32xf32>
    %306 = vector.broadcast %303 : vector<1x32xf32> to vector<16x32xf32>
    %307 = arith.addf %305, %306 : vector<16x32xf32>
    %308 = arith.addf %6, %307 : vector<16x32xf32>
    %cst_131 = arith.constant dense<0.000000e+00> : vector<16xf32>
    %309 = vector.multi_reduction <add>, %308, %cst_131 [1] : vector<16x32xf32> to vector<16xf32>
    %310 = vector.shape_cast %309 : vector<16xf32> to vector<16x1xf32>
    %cst_132 = arith.constant 3.200000e+01 : f32
    %311 = vector.broadcast %cst_132 : f32 to vector<16x1xf32>
    %312 = arith.divf %310, %311 : vector<16x1xf32>
    %313 = vector.broadcast %312 : vector<16x1xf32> to vector<16x32xf32>
    %314 = arith.subf %308, %313 : vector<16x32xf32>
    %315 = arith.mulf %314, %314 : vector<16x32xf32>
    %cst_133 = arith.constant dense<0.000000e+00> : vector<16xf32>
    %316 = vector.multi_reduction <add>, %315, %cst_133 [1] : vector<16x32xf32> to vector<16xf32>
    %317 = vector.shape_cast %316 : vector<16xf32> to vector<16x1xf32>
    %cst_134 = arith.constant 3.200000e+01 : f32
    %318 = vector.broadcast %cst_134 : f32 to vector<16x1xf32>
    %319 = arith.divf %317, %318 : vector<16x1xf32>
    %320 = vector.broadcast %312 : vector<16x1xf32> to vector<16x32xf32>
    %321 = arith.subf %308, %320 : vector<16x32xf32>
    %cst_135 = arith.constant 9.99999997E-7 : f32
    %322 = vector.broadcast %cst_135 : f32 to vector<16x1xf32>
    %323 = arith.addf %319, %322 : vector<16x1xf32>
    %324 = math.rsqrt %323 : vector<16x1xf32>
    %325 = vector.broadcast %324 : vector<16x1xf32> to vector<16x32xf32>
    %326 = arith.mulf %321, %325 : vector<16x32xf32>
    %c24 = arith.constant 24 : index
    %c0_136 = arith.constant 0 : index
    %327 = vector.load %arg3[%c24, %c0_136] : memref<128x32xf32, #tpu.memory_space<vmem>>, vector<1x32xf32>
    %328 = vector.broadcast %327 : vector<1x32xf32> to vector<16x32xf32>
    %329 = arith.mulf %326, %328 : vector<16x32xf32>
    %c25 = arith.constant 25 : index
    %c0_137 = arith.constant 0 : index
    %330 = vector.load %arg3[%c25, %c0_137] : memref<128x32xf32, #tpu.memory_space<vmem>>, vector<1x32xf32>
    %331 = vector.broadcast %330 : vector<1x32xf32> to vector<16x32xf32>
    %332 = arith.addf %329, %331 : vector<16x32xf32>
    %c10_138 = arith.constant 10 : index
    %c0_139 = arith.constant 0 : index
    %c0_140 = arith.constant 0 : index
    %333 = vector.load %arg1[%c10_138, %c0_139, %c0_140] : memref<11x32x128xbf16, #tpu.memory_space<vmem>>, vector<1x32x64xbf16>
    %334 = vector.shape_cast %333 : vector<1x32x64xbf16> to vector<32x64xbf16>
    %335 = arith.truncf %332 : vector<16x32xf32> to vector<16x32xbf16>
    %cst_141 = arith.constant dense<0.000000e+00> : vector<16x64xf32>
    %336 = tpu.matmul %335, %334, %cst_141 {dimension_numbers = #tpu.dot_dimension_numbers<[1], [0], [0], [1], [0, 0, 1, 1], [], []>} : vector<16x32xbf16>, vector<32x64xbf16>, vector<16x64xf32> -> vector<16x64xf32>
    %337 = vector.broadcast %8 : vector<1x64xf32> to vector<16x64xf32>
    %338 = arith.addf %336, %337 : vector<16x64xf32>
    %339 = vector.extract_strided_slice %338 {offsets = [0, 0], sizes = [8, 64], strides = [1, 1]} : vector<16x64xf32> to vector<8x64xf32>
    %c0_142 = arith.constant 0 : index
    %c0_143 = arith.constant 0 : index
    %c0_144 = arith.constant 0 : index
    %340 = vector.load %arg7[%c0_142, %c0_143, %c0_144] : memref<2x8x64xf32, #tpu.memory_space<vmem>>, vector<1x8x64xf32>
    %341 = vector.shape_cast %340 : vector<1x8x64xf32> to vector<8x64xf32>
    %342 = vector.shape_cast %339 : vector<8x64xf32> to vector<1x8x64xf32>
    tpu.vector_store %arg7[%c0_142, %c0_143, %c0_144], %342 {strides = array<i32>} : memref<2x8x64xf32, #tpu.memory_space<vmem>>, vector<1x8x64xf32>,
    %343 = vector.extract_strided_slice %338 {offsets = [8, 0], sizes = [8, 64], strides = [1, 1]} : vector<16x64xf32> to vector<8x64xf32>
    %c1_145 = arith.constant 1 : index
    %c0_146 = arith.constant 0 : index
    %c0_147 = arith.constant 0 : index
    %344 = vector.load %arg7[%c1_145, %c0_146, %c0_147] : memref<2x8x64xf32, #tpu.memory_space<vmem>>, vector<1x8x64xf32>
    %345 = vector.shape_cast %344 : vector<1x8x64xf32> to vector<8x64xf32>
    %346 = vector.shape_cast %343 : vector<8x64xf32> to vector<1x8x64xf32>
    tpu.vector_store %arg7[%c1_145, %c0_146, %c0_147], %346 {strides = array<i32>} : memref<2x8x64xf32, #tpu.memory_space<vmem>>, vector<1x8x64xf32>,
    return
  }
}

</mosaic_0001>

<bundles_post_ra>
// kernel: visual_tokenizer_forward.1
= control target key start
LH: loop header
LB: loop body
LE: loop exit
PB: predicated region body
PF: predicated region fallthrough
CT: control target
= control target key end

     0   :  { %v2848_v1 = vmov 0.0   ;;  %vm2849_vm0 = vmmov 0   ;;  %vm96_vm1 = vcmask 392192   ;;  %s3571_s0 = inlined_call_operand.vmem [shape: f32[34,48], index: 0, kind: input, shape index: {}]   ;;  %s3572_s1 = inlined_call_operand.vmem [shape: bf16[11,32,128], index: 1, kind: input, shape index: {}]   ;;  %s3573_s2 = inlined_call_operand.vmem [shape: bf16[176,32], index: 2, kind: input, shape index: {}]   ;;  %s3574_s3 = inlined_call_operand.vmem [shape: f32[128,32], index: 3, kind: input, shape index: {}]   ;;  %s3575_s4 = inlined_call_operand.vmem [shape: f32[2,128], index: 4, kind: input, shape index: {}]   ;;  %s3576_s5 = inlined_call_operand.vmem [shape: f32[56,34], index: 5, kind: input, shape index: {}]   ;;  %s3577_s6 = inlined_call_operand.vmem [shape: f32[34,32], index: 6, kind: output, shape index: {0}]   ;;  %s3578_s7 = inlined_call_operand.hbm [shape: f32[2,8,64], index: 7, kind: output, shape index: {1}]  }
   0x1   :  { %v2685_v0 = vld [vmem:[%s3573_s2] sm:$0xff]   ;;  %2426 = vmatprep.subr.bf16.mxu0 %v2848_v1  ;;  %2444 = vmatprep.subr.bf16.mxu1 %v2848_v1  ;;  %v2686_v2 = vld [vmem:[%s3573_s2 + $0x8] sm:$0xff]   ;;  %v2687_v3 = vld [vmem:[%s3573_s2 + $0x10] sm:$0xff]  }
   0x2   :  { %2427 = vmatpush3.bf16.msra.mxu0 %v2685_v0  ;;  %2432 = vmatprep.mubr.msk.bf16.mxu0 %vm2849_vm0, %v2848_v1  ;;  %v70_v4 = vld [vmem:[%s3571_s0] sm:$0xff]  ;;  %v71_v5 = vld [vmem:[%s3571_s0 + $0x8] sm:$0xff]  ;;  %v72_v7 = vld [vmem:[%s3571_s0 + $0x10] sm:$0xff] }
   0x3   :  { %2428 = vmatprep.subr.bf16.mxu0 %v2848_v1  ;;  %2448 = vmatprep.mubr.msk.bf16.mxu1 %vm2849_vm0, %v2848_v1  ;;  %v75_v6 = vpack.c.bf16 %v71_v5, %v70_v4  ;;  %v73_v8 = vld [vmem:[%s3571_s0 + $0x18] sm:$0xff]  ;;  %v74_v10 = vld [vmem:[%s3571_s0 + $0x20] sm:$0x3] }
   0x4   :  { %v76_v9 = vpack.c.bf16 %v73_v8, %v72_v7  ;;  %v77_v11 = vpack.c.bf16 %v74_v10, %v74_v10 }
   0x6   :  { %2429 = vmatpush3.bf16.msra.mxu0 %v2686_v2 }
   0x7   :  { %2430 = vmatprep.subr.bf16.mxu0 %v2848_v1 }
   0xa   :  { %2431 = vmatpush3.bf16.msra.mxu0 %v2687_v3 }
   0xb   :  { %2476 = vmatprep.subr.bf16.mxu0 %v2848_v1 }
   0xd   :  { %2433 = vmatmul.mubr.msk.bf16.vlgmr.msra.gmra.mrb[0].mxu0 %vm96_vm1, %v75_v6 }
   0xe   :  { %2436 = vmatprep.mubr.msk.bf16.mxu0 %vm2849_vm0, %v2848_v1 }
  0x15   :  { %2437 = vmatmul.mubr.msk.bf16.gmra.mrb[4].mxu0 %vm96_vm1, %v76_v9 }
  0x16   :  { %2440 = vmatprep.mubr.msk.bf16.mxu0 %vm2849_vm0, %v2848_v1 }
  0x17   :  { %13 = vsyncpa [#allocation3], 0  ;;  %v56_v12 = vld [vmem:[%s3574_s3 + $0x20] sm:$0xff]  ;;  %v57_v14 = vld [vmem:[%s3574_s3 + $0x28] sm:$0xff]  ;;  %vm162_vm2 = vcmask 261120   ;;  %vm175_vm3 = vcmask 254976  }
  0x18   :  { %v58_v21 = vld [vmem:[%s3574_s3 + $0x30] sm:$0xff]  ;;  %v59_v24 = vld [vmem:[%s3574_s3 + $0x38] sm:$0xff]  ;;  %v60_v31 = vld [vmem:[%s3574_s3 + $0x40] sm:$0x3]  ;;  %vm647_vm4 = vcmask 1040384   ;;  %vm588_vm5 = vcmask 277504  }
  0x19   :  { %v2688_v0 = vld [vmem:[%s3572_s1] sm:$0xff]   ;;  %v2690_v3 = vld [vmem:[%s3572_s1 + $0x8] sm:$0xff]   ;;  %vm601_vm6 = vcmask 271360   ;;  %s2850_s27 = smov [#allocation2]   ;;  %vm2177_vm7 = vcmask 523264  }
  0x1a   :  { %v2689_v2 = vld [vmem:[%s3572_s1 + $0x20] sm:$0xff]   ;;  %2445 = vmatpush3.bf16.msra.mxu1 %v2688_v0  ;;  %v2691_v4 = vld [vmem:[%s3572_s1 + $0x28] sm:$0xff]   ;;  %s2188_s28 = sshll.u32 %s2850_s27, 4  ;;  %s2189_s28 = int_to_ptr.vmem [resolvable:$true] %s2188_s28 }
  0x1b   :  { %2477 = vmatpush3.bf16.msra.mxu0 %v2689_v2  ;;  %2446 = vmatprep.subr.bf16.mxu1 %v2848_v1  ;;  %p2829_p1 = scmp.lt.s32.totalorder %s2189_s28, %s2189_s28 }
  0x1c   :  { %2478 = vmatprep.subr.bf16.mxu0 %v2848_v1 }
  0x1d   :  { %2441 = vmatmul.mubr.msk.bf16.gmra.mrb[8].mxu0 %vm96_vm1, %v77_v11 }
  0x1e   :  { %2480 = vmatprep.mubr.msk.bf16.mxu0 %vm2849_vm0, %v2848_v1  ;;  %2447 = vmatpush3.bf16.msra.mxu1 %v2690_v3 }
  0x1f   :  { %2479 = vmatpush3.bf16.msra.mxu0 %v2691_v4  ;;  %2460 = vmatprep.subr.bf16.mxu1 %v2848_v1 }
  0x20   :  { %2510 = vmatprep.subr.bf16.mxu0 %v2848_v1 }
  0xe0   :  { %v140_v13 = vpop.f32.mrb[0].mxu0 }
  0xe1   :  { %v2941_v15 = vadd.f32 %v140_v13, %v56_v12  ;;  %v2434_v16 = vpop.f32.mrb[1].mxu0 }
  0xe2   :  { %v143_v17 = vpop.f32.mrb[2].mxu0 }
  0xe3   :  { %v2943_v18 = vadd.f32 %v143_v17, %v57_v14  ;;  %v2435_v19 = vpop.f32.mrb[3].mxu0  ;;  %v163_v20 = vsel %vm162_vm2, %v2941_v15, 0.0 }
  0xe4   :  { %164 = vadd.xlane.f32.xlu0 %v163_v20 }
  0xe5   :  { %v166_v22 = vsel %vm162_vm2, %v2943_v18, 0.0 }
  0xe8   :  { %167 = vadd.xlane.f32.xlu0 %v166_v22  ;;  %v148_v23 = vpop.f32.mrb[4].mxu0 }
  0xe9   :  { %v2955_v25 = vadd.f32 %v148_v23, %v58_v21  ;;  %v2438_v26 = vpop.f32.mrb[5].mxu0  ;;  %v2207_v23 = vld [vmem:[%s3574_s3] ss:$0 sm:$0xff] }
  0xea   :  { %v151_v27 = vpop.f32.mrb[6].mxu0 }
  0xeb   :  { %v2957_v28 = vadd.f32 %v151_v27, %v59_v24  ;;  %v2439_v29 = vpop.f32.mrb[7].mxu0  ;;  %v169_v30 = vsel %vm162_vm2, %v2955_v25, 0.0 }
  0xec   :  { %170 = vadd.xlane.f32.xlu1 %v169_v30  ;;  %v2208_v30 = vld [vmem:[%s3574_s3 + $0x1] ss:$0 sm:$0xff] }
  0xed   :  { %v172_v32 = vsel %vm162_vm2, %v2957_v28, 0.0 }
  0xf0   :  { %173 = vadd.xlane.f32.xlu1 %v172_v32  ;;  %v156_v33 = vpop.f32.mrb[8].mxu0 }
  0xf1   :  { %v2966_v34 = vadd.f32 %v156_v33, %v60_v31  ;;  %v2442_v35 = vpop.f32.mrb[9].mxu0 }
  0xf2   :  { %v159_v36 = vpop.f32.mrb[10].mxu0 }
  0xf3   :  { %v176_v37 = vsel %vm175_vm3, %v2966_v34, 0.0  ;;  %v2443_v38 = vpop.f32.mrb[11].mxu0 }
  0xf4   :  { %177 = vadd.xlane.f32.xlu0 %v176_v37  ;;  %v2692_v37 = vld [vmem:[%s3572_s1 + $0x10] sm:$0xff]  }
 0x171   :  { %v165_v39 = vpop.xlane.xlu0 %164 }
 0x172   :  { %v180_v40 = vmul.f32 0.03125, %v165_v39 }
 0x174   :  { %v185_v41 = vsub.f32 %v2941_v15, %v180_v40 }
 0x175   :  { %v168_v42 = vpop.xlane.xlu0 %167 }
 0x176   :  { %v181_v43 = vmul.f32 0.03125, %v168_v42  ;;  %v190_v44 = vmul.f32 %v185_v41, %v185_v41  ;;  %v2693_v42 = vld [vmem:[%s3572_s1 + $0x18] sm:$0xff]  }
 0x178   :  { %v186_v45 = vsub.f32 %v2943_v18, %v181_v43  ;;  %v195_v46 = vsel %vm162_vm2, %v190_v44, 0.0 }
 0x179   :  { %v171_v47 = vpop.xlane.xlu1 %170  ;;  %196 = vadd.xlane.f32.xlu1 %v195_v46 }
 0x17a   :  { %v182_v48 = vmul.f32 0.03125, %v171_v47  ;;  %v191_v49 = vmul.f32 %v186_v45, %v186_v45 }
 0x17c   :  { %v187_v50 = vsub.f32 %v2955_v25, %v182_v48  ;;  %v198_v51 = vsel %vm162_vm2, %v191_v49, 0.0 }
 0x17d   :  { %v174_v52 = vpop.xlane.xlu1 %173  ;;  %199 = vadd.xlane.f32.xlu0 %v198_v51 }
 0x17e   :  { %v183_v53 = vmul.f32 0.03125, %v174_v52  ;;  %v192_v54 = vmul.f32 %v187_v50, %v187_v50  ;;  %v3045_v52 = vld [vmem:[%s3574_s3 + $0x2] ss:$0 sm:$0xff] }
 0x180   :  { %v188_v55 = vsub.f32 %v2957_v28, %v183_v53  ;;  %v201_v56 = vsel %vm162_vm2, %v192_v54, 0.0  ;;  %v2229_v54 = vld [vmem:[%s3574_s3 + $0x4] ss:$0 sm:$0xff] }
 0x181   :  { %202 = vadd.xlane.f32.xlu1 %v201_v56  ;;  %v178_v57 = vpop.xlane.xlu0 %177 }
 0x182   :  { %v184_v58 = vmul.f32 0.03125, %v178_v57  ;;  %v193_v59 = vmul.f32 %v188_v55, %v188_v55 }
 0x184   :  { %v2978_v60 = vsub.f32 %v2966_v34, %v184_v58  ;;  %v204_v61 = vsel %vm162_vm2, %v193_v59, 0.0 }
 0x185   :  { %205 = vadd.xlane.f32.xlu0 %v204_v61 }
 0x186   :  { %v194_v62 = vmul.f32 %v2978_v60, %v2978_v60 }
 0x188   :  { %v207_v63 = vsel %vm175_vm3, %v194_v62, 0.0 }
 0x189   :  { %208 = vadd.xlane.f32.xlu1 %v207_v63 }
 0x206   :  { %v197_v5 = vpop.xlane.xlu1 %196 }
 0x207   :  { %v210_v6 = vmul.f32 0.03125, %v197_v5 }
 0x209   :  { %v215_v7 = vadd.f32 1e-06, %v210_v6 }
 0x20a   :  { %v200_v8 = vpop.xlane.xlu0 %199 }
 0x20b   :  { %2718 = vrsqrt.f32 %v215_v7  ;;  %v211_v9 = vmul.f32 0.03125, %v200_v8 }
 0x20d   :  { %v216_v10 = vadd.f32 1e-06, %v211_v9 }
 0x20e   :  { %v203_v11 = vpop.xlane.xlu1 %202 }
 0x20f   :  { %2720 = vrsqrt.f32 %v216_v10  ;;  %v212_v12 = vmul.f32 0.03125, %v203_v11 }
 0x211   :  { %v217_v13 = vadd.f32 1e-06, %v212_v12 }
 0x212   :  { %v206_v14 = vpop.xlane.xlu0 %205 }
 0x213   :  { %2722 = vrsqrt.f32 %v217_v13  ;;  %v213_v16 = vmul.f32 0.03125, %v206_v14 }
 0x215   :  { %v2719_v17 = vpop.eup %2718  ;;  %v218_v19 = vadd.f32 1e-06, %v213_v16 }
 0x216   :  { %v225_v20 = vmul.f32 %v2719_v17, %v185_v41  ;;  %v209_v21 = vpop.xlane.xlu1 %208 }
 0x217   :  { %2724 = vrsqrt.f32 %v218_v19  ;;  %v214_v22 = vmul.f32 0.03125, %v209_v21 }
 0x218   :  { %v235_v29 = vmul.f32 %v2207_v23, %v225_v20 }
 0x219   :  { %v2721_v24 = vpop.eup %2720  ;;  %v219_v26 = vadd.f32 1e-06, %v214_v22 }
 0x21a   :  { %v226_v27 = vmul.f32 %v2721_v24, %v186_v45  ;;  %v245_v35 = vadd.f32 %v2208_v30, %v235_v29 }
 0x21b   :  { %2726 = vrsqrt.f32 %v219_v26 }
 0x21c   :  { %v236_v31 = vmul.f32 %v2207_v23, %v226_v27 }
 0x21d   :  { %v2723_v32 = vpop.eup %2722 }
 0x21e   :  { %v227_v33 = vmul.f32 %v2723_v32, %v187_v50  ;;  %v246_v36 = vadd.f32 %v2208_v30, %v236_v31 }
 0x220   :  { %v250_v38 = vpack.c.bf16 %v246_v36, %v245_v35  ;;  %v237_v41 = vmul.f32 %v2207_v23, %v227_v33  ;;  %v2219_v35 = vld [vmem:[%s3574_s3 + $0x3] ss:$0 sm:$0xff] }
 0x221   :  { %v2725_v39 = vpop.eup %2724 }
 0x222   :  { %v228_v40 = vmul.f32 %v2725_v39, %v188_v55  ;;  %2449 = vmatmul.mubr.msk.bf16.vlgmr.msra.gmra.mrb[0].mxu1 %vm162_vm2, %v250_v38  ;;  %2481 = vmatmul.mubr.msk.bf16.vlgmr.msra.gmra.mrb[12].mxu0 %vm162_vm2, %v250_v38  ;;  %v247_v45 = vadd.f32 %v2208_v30, %v237_v41 }
 0x223   :  { %2461 = vmatpush3.bf16.msra.mxu1 %v2692_v37  ;;  %2452 = vmatprep.mubr.msk.bf16.mxu1 %vm2849_vm0, %v2848_v1 }
 0x224   :  { %2484 = vmatprep.mubr.msk.bf16.mxu0 %vm2849_vm0, %v2848_v1  ;;  %v238_v43 = vmul.f32 %v2207_v23, %v228_v40  ;;  %2462 = vmatprep.subr.bf16.mxu1 %v2848_v1 }
 0x225   :  { %v2727_v44 = vpop.eup %2726 }
 0x226   :  { %v248_v46 = vadd.f32 %v2208_v30, %v238_v43  ;;  %v229_v47 = vmul.f32 %v2727_v44, %v2978_v60 }
 0x227   :  { %2463 = vmatpush3.bf16.msra.mxu1 %v2693_v42 }
 0x228   :  { %v251_v48 = vpack.c.bf16 %v248_v46, %v247_v45  ;;  %v239_v49 = vmul.f32 %v2207_v23, %v229_v47  ;;  %2492 = vmatprep.subr.bf16.mxu1 %v2848_v1 }
 0x22a   :  { %2453 = vmatmul.mubr.msk.bf16.gmra.mrb[4].mxu1 %vm162_vm2, %v251_v48  ;;  %2485 = vmatmul.mubr.msk.bf16.gmra.mrb[16].mxu0 %vm162_vm2, %v251_v48  ;;  %v249_v50 = vadd.f32 %v2208_v30, %v239_v49 }
 0x22b   :  { %2456 = vmatprep.mubr.msk.bf16.mxu1 %vm2849_vm0, %v2848_v1  ;;  %2488 = vmatprep.mubr.msk.bf16.mxu0 %vm2849_vm0, %v2848_v1 }
 0x22c   :  { %v252_v51 = vpack.c.bf16 %v249_v50, %v249_v50 }
 0x232   :  { %2457 = vmatmul.mubr.msk.bf16.gmra.mrb[8].mxu1 %vm162_vm2, %v252_v51  ;;  %2489 = vmatmul.mubr.msk.bf16.gmra.mrb[20].mxu0 %vm162_vm2, %v252_v51 }
 0x233   :  { %2464 = vmatprep.mubr.msk.bf16.mxu1 %vm2849_vm0, %v2848_v1  ;;  %2516 = vmatprep.mubr.msk.bf16.mxu0 %vm2849_vm0, %v2848_v1 }
 0x23a   :  { %2465 = vmatmul.mubr.msk.bf16.vlgmr.msra.gmra.mrb[12].mxu1 %vm162_vm2, %v250_v38 }
 0x23b   :  { %2468 = vmatprep.mubr.msk.bf16.mxu1 %vm2849_vm0, %v2848_v1 }
 0x242   :  { %2469 = vmatmul.mubr.msk.bf16.gmra.mrb[16].mxu1 %vm162_vm2, %v251_v48 }
 0x243   :  { %2472 = vmatprep.mubr.msk.bf16.mxu1 %vm2849_vm0, %v2848_v1 }
 0x24a   :  { %2473 = vmatmul.mubr.msk.bf16.gmra.mrb[20].mxu1 %vm162_vm2, %v252_v51 }
 0x24b   :  { %2498 = vmatprep.mubr.msk.bf16.mxu1 %vm2849_vm0, %v2848_v1 }
 0x2f5   :  { %v317_v53 = vpop.f32.mrb[0].mxu1  ;;  %v473_v55 = vpop.f32.mrb[12].mxu0 }
 0x2f6   :  { %v2450_v56 = vpop.f32.mrb[1].mxu1  ;;  %v2482_v57 = vpop.f32.mrb[13].mxu0  ;;  %v3051_v60 = vadd.f32 %v3045_v52, %v317_v53  ;;  %v474_v61 = vadd.f32 %v2229_v54, %v473_v55 }
 0x2f7   :  { %v320_v58 = vpop.f32.mrb[2].mxu1  ;;  %v476_v59 = vpop.f32.mrb[14].mxu0 }
 0x2f8   :  { %v3054_v62 = vadd.f32 %v3045_v52, %v320_v58  ;;  %v477_v63 = vadd.f32 %v2229_v54, %v476_v59  ;;  %v2451_v0 = vpop.f32.mrb[3].mxu1  ;;  %v2483_v2 = vpop.f32.mrb[15].mxu0 }
 0x2fa   :  { %v495_v3 = vpack.c.bf16 %v3054_v62, %v3051_v60  ;;  %v501_v4 = vpack.c.bf16 %v477_v63, %v474_v61  ;;  %v27_v60 = vld [vmem:[%s3576_s5] sm:$0xff] }
 0x2fc   :  { %2511 = vmatpush3.bf16.msra.mxu0 %v501_v4  ;;  %v28_v4 = vld [vmem:[%s3576_s5 + $0x8] sm:$0xff] }
 0x2fd   :  { %v325_v5 = vpop.f32.mrb[4].mxu1  ;;  %v481_v6 = vpop.f32.mrb[16].mxu0  ;;  %2512 = vmatprep.subr.bf16.mxu0 %v2848_v1 }
 0x2fe   :  { %v2454_v7 = vpop.f32.mrb[5].mxu1  ;;  %v2486_v8 = vpop.f32.mrb[17].mxu0  ;;  %v326_v11 = vadd.f32 %v3045_v52, %v325_v5  ;;  %v482_v12 = vadd.f32 %v2229_v54, %v481_v6 }
 0x2ff   :  { %v328_v9 = vpop.f32.mrb[6].mxu1  ;;  %v484_v10 = vpop.f32.mrb[18].mxu0 }
 0x300   :  { %v329_v13 = vadd.f32 %v3045_v52, %v328_v9  ;;  %v485_v14 = vadd.f32 %v2229_v54, %v484_v10  ;;  %v2455_v16 = vpop.f32.mrb[7].mxu1  ;;  %v2487_v17 = vpop.f32.mrb[19].mxu0 }
 0x301   :  { %v30_v16 = vld [vmem:[%s3576_s5 + $0x18] sm:$0xff] }
 0x302   :  { %v496_v19 = vpack.c.bf16 %v329_v13, %v326_v11  ;;  %v502_v20 = vpack.c.bf16 %v485_v14, %v482_v12  ;;  %v29_v11 = vld [vmem:[%s3576_s5 + $0x10] sm:$0xff] }
 0x304   :  { %2513 = vmatpush3.bf16.msra.mxu0 %v502_v20 }
 0x305   :  { %v333_v21 = vpop.f32.mrb[8].mxu1  ;;  %v489_v22 = vpop.f32.mrb[20].mxu0  ;;  %2514 = vmatprep.subr.bf16.mxu0 %v2848_v1 }
 0x306   :  { %v490_v23 = vadd.f32 %v2229_v54, %v489_v22  ;;  %v2458_v24 = vpop.f32.mrb[9].mxu1  ;;  %v2490_v26 = vpop.f32.mrb[21].mxu0  ;;  %v334_v61 = vadd.f32 %v3045_v52, %v333_v21 }
 0x307   :  { %v336_v27 = vpop.f32.mrb[10].mxu1  ;;  %v492_v29 = vpop.f32.mrb[22].mxu0  ;;  %v31_v26 = vld [vmem:[%s3576_s5 + $0x20] sm:$0x3] }
 0x308   :  { %v503_v30 = vpack.c.bf16 %v490_v23, %v490_v23  ;;  %v2459_v31 = vpop.f32.mrb[11].mxu1  ;;  %v2491_v32 = vpop.f32.mrb[23].mxu0  ;;  %v497_v63 = vpack.c.bf16 %v334_v61, %v334_v61 }
 0x30a   :  { %v649_v33 = vsel %vm647_vm4, %v503_v30, 0 }
 0x30b   :  { %2515 = vmatpush3.bf16.msra.mxu0 %v649_v33 }
 0x30c   :  { %2544 = vmatprep.subr.bf16.mxu0 %v2848_v1 }
 0x30d   :  { %v395_v36 = vpop.f32.mrb[12].mxu1 }
 0x30e   :  { %v2466_v37 = vpop.f32.mrb[13].mxu1  ;;  %v396_v39 = vadd.f32 %v2219_v35, %v395_v36 }
 0x30f   :  { %v398_v38 = vpop.f32.mrb[14].mxu1 }
 0x310   :  { %v399_v40 = vadd.f32 %v2219_v35, %v398_v38  ;;  %v2467_v41 = vpop.f32.mrb[15].mxu1 }
 0x312   :  { %v498_v42 = vpack.c.bf16 %v399_v40, %v396_v39 }
 0x314   :  { %v514_v43 = vsel %vm162_vm2, %v498_v42, 0 }
 0x315   :  { %v403_v44 = vpop.f32.mrb[16].mxu1  ;;  %2493 = vmatpush3.bf16.xpose.msra.mxu1 %v514_v43 }
 0x316   :  { %v2470_v45 = vpop.f32.mrb[17].mxu1  ;;  %2494 = vmatprep.subr.bf16.mxu1 %v2848_v1  ;;  %v404_v47 = vadd.f32 %v2219_v35, %v403_v44 }
 0x317   :  { %v406_v46 = vpop.f32.mrb[18].mxu1 }
 0x318   :  { %v407_v48 = vadd.f32 %v2219_v35, %v406_v46  ;;  %v2471_v49 = vpop.f32.mrb[19].mxu1 }
 0x31a   :  { %v499_v50 = vpack.c.bf16 %v407_v48, %v404_v47 }
 0x31c   :  { %v517_v51 = vsel %vm162_vm2, %v499_v50, 0 }
 0x31d   :  { %v411_v53 = vpop.f32.mrb[20].mxu1  ;;  %2495 = vmatpush3.bf16.xpose.msra.mxu1 %v517_v51 }
 0x31e   :  { %v412_v54 = vadd.f32 %v2219_v35, %v411_v53  ;;  %v2474_v55 = vpop.f32.mrb[21].mxu1  ;;  %2496 = vmatprep.subr.bf16.mxu1 %v2848_v1 }
 0x31f   :  { %v414_v56 = vpop.f32.mrb[22].mxu1 }
 0x320   :  { %v500_v57 = vpack.c.bf16 %v412_v54, %v412_v54  ;;  %v2475_v58 = vpop.f32.mrb[23].mxu1 }
 0x322   :  { %v520_v59 = vsel %vm162_vm2, %v500_v57, 0 }
 0x325   :  { %2497 = vmatpush3.bf16.xpose.msra.mxu1 %v520_v59 }
 0x326   :  { %2528 = vmatprep.subr.bf16.mxu1 %v2848_v1 }
 0x32c   :  { %2499 = vmatmul.mubr.msk.bf16.vlgmr.msra.gmra.mrb[24].mxu1 %vm162_vm2, %v495_v3 }
 0x32d   :  { %2502 = vmatprep.mubr.msk.bf16.mxu1 %vm2849_vm0, %v2848_v1 }
 0x334   :  { %2503 = vmatmul.mubr.msk.bf16.gmra.mrb[28].mxu1 %vm162_vm2, %v496_v19 }
 0x335   :  { %2506 = vmatprep.mubr.msk.bf16.mxu1 %vm2849_vm0, %v2848_v1 }
 0x33c   :  { %2507 = vmatmul.mubr.msk.bf16.gmra.mrb[32].mxu1 %vm162_vm2, %v497_v63 }
 0x33d   :  { %2532 = vmatprep.mubr.msk.bf16.mxu1 %vm2849_vm0, %v2848_v1 }
 0x3ff   :  { %v556_v0 = vpop.f32.mrb[24].mxu1 }
 0x400   :  { %v578_v62 = vmul.f32 0.17677669, %v556_v0  ;;  %v2500_v2 = vpop.f32.mrb[25].mxu1 }
 0x401   :  { %v559_v3 = vpop.f32.mrb[26].mxu1  ;;  %v2695_v2 = vld [vmem:[%s3572_s1 + $0x38] sm:$0xff]  }
 0x402   :  { %v579_v52 = vmul.f32 0.17677669, %v559_v3  ;;  %v2501_v5 = vpop.f32.mrb[27].mxu1  ;;  %v583_v6 = vadd.f32 %v578_v62, %v27_v60  ;;  %v2694_v62 = vld [vmem:[%s3572_s1 + $0x30] sm:$0xff]  }
 0x403   :  { %2529 = vmatpush3.bf16.msra.mxu1 %v2694_v62 }
 0x404   :  { %v589_v7 = vsel %vm588_vm5, %v583_v6, -inf  ;;  %v584_v8 = vadd.f32 %v579_v52, %v28_v4  ;;  %2530 = vmatprep.subr.bf16.mxu1 %v2848_v1 }
 0x405   :  { %590 = vmax.xlane.f32.xlu0 %v589_v7 }
 0x406   :  { %v592_v9 = vsel %vm588_vm5, %v584_v8, -inf }
 0x407   :  { %v564_v10 = vpop.f32.mrb[28].mxu1  ;;  %593 = vmax.xlane.f32.xlu1 %v592_v9  ;;  %2531 = vmatpush3.bf16.msra.mxu1 %v2695_v2 }
 0x408   :  { %v580_v12 = vmul.f32 0.17677669, %v564_v10  ;;  %v2504_v13 = vpop.f32.mrb[29].mxu1  ;;  %2560 = vmatprep.subr.bf16.mxu1 %v2848_v1 }
 0x409   :  { %v567_v14 = vpop.f32.mrb[30].mxu1 }
 0x40a   :  { %v581_v17 = vmul.f32 0.17677669, %v567_v14  ;;  %v2505_v19 = vpop.f32.mrb[31].mxu1  ;;  %v585_v20 = vadd.f32 %v580_v12, %v29_v11 }
 0x40c   :  { %v595_v21 = vsel %vm588_vm5, %v585_v20, -inf  ;;  %v586_v22 = vadd.f32 %v581_v17, %v30_v16 }
 0x40d   :  { %596 = vmax.xlane.f32.xlu0 %v595_v21 }
 0x40e   :  { %v598_v23 = vsel %vm588_vm5, %v586_v22, -inf }
 0x40f   :  { %v572_v24 = vpop.f32.mrb[32].mxu1  ;;  %599 = vmax.xlane.f32.xlu1 %v598_v23 }
 0x410   :  { %v582_v27 = vmul.f32 0.17677669, %v572_v24  ;;  %v2508_v29 = vpop.f32.mrb[33].mxu1 }
 0x411   :  { %v575_v30 = vpop.f32.mrb[34].mxu1 }
 0x412   :  { %v2509_v31 = vpop.f32.mrb[35].mxu1  ;;  %v587_v32 = vadd.f32 %v582_v27, %v31_v26 }
 0x414   :  { %v602_v33 = vsel %vm601_vm6, %v587_v32, -inf }
 0x415   :  { %603 = vmax.xlane.f32.xlu0 %v602_v33 }
 0x492   :  { %v591_v35 = vpop.xlane.xlu0 %590 }
 0x493   :  { %v605_v36 = vsub.f32 %v583_v6, %v591_v35 }
 0x494   :  { %v594_v37 = vpop.xlane.xlu1 %593 }
 0x495   :  { %v610_v38 = vmul.f32 1.442695, %v605_v36  ;;  %v606_v39 = vsub.f32 %v584_v8, %v594_v37  ;;  %v2245_v37 = vld [vmem:[%s3574_s3 + $0x5] ss:$0 sm:$0xff] }
 0x497   :  { %2728 = vpow2.f32 %v610_v38  ;;  %v612_v40 = vmul.f32 1.442695, %v606_v39 }
 0x499   :  { %2730 = vpow2.f32 %v612_v40 }
 0x49a   :  { %v597_v41 = vpop.xlane.xlu0 %596 }
 0x49b   :  { %v607_v42 = vsub.f32 %v585_v20, %v597_v41 }
 0x49c   :  { %v600_v43 = vpop.xlane.xlu1 %599 }
 0x49d   :  { %v614_v44 = vmul.f32 1.442695, %v607_v42  ;;  %v608_v45 = vsub.f32 %v586_v22, %v600_v43 }
 0x49f   :  { %2732 = vpow2.f32 %v614_v44  ;;  %v616_v46 = vmul.f32 1.442695, %v608_v45 }
 0x4a1   :  { %v2729_v47 = vpop.eup %2728  ;;  %2734 = vpow2.f32 %v616_v46 }
 0x4a2   :  { %v604_v48 = vpop.xlane.xlu0 %603  ;;  %v620_v49 = vsel %vm588_vm5, %v2729_v47, 0.0 }
 0x4a3   :  { %v2731_v50 = vpop.eup %2730  ;;  %v609_v51 = vsub.f32 %v587_v32, %v604_v48  ;;  %621 = vadd.xlane.f32.xlu1 %v620_v49 }
 0x4a4   :  { %v635_v53 = vpack.c.bf16 %v2731_v50, %v2729_v47  ;;  %v623_v54 = vsel %vm588_vm5, %v2731_v50, 0.0 }
 0x4a5   :  { %v618_v55 = vmul.f32 1.442695, %v609_v51  ;;  %624 = vadd.xlane.f32.xlu0 %v623_v54 }
 0x4a6   :  { %2517 = vmatmul.mubr.msk.bf16.vlgmr.msra.gmra.mrb[24].mxu0 %vm588_vm5, %v635_v53 }
 0x4a7   :  { %2736 = vpow2.f32 %v618_v55  ;;  %2520 = vmatprep.mubr.msk.bf16.mxu0 %vm2849_vm0, %v2848_v1 }
 0x4a9   :  { %v2733_v56 = vpop.eup %2732 }
 0x4aa   :  { %v626_v57 = vsel %vm588_vm5, %v2733_v56, 0.0 }
 0x4ab   :  { %v2735_v58 = vpop.eup %2734  ;;  %627 = vadd.xlane.f32.xlu1 %v626_v57 }
 0x4ac   :  { %v629_v59 = vsel %vm588_vm5, %v2735_v58, 0.0  ;;  %v636_v61 = vpack.c.bf16 %v2735_v58, %v2733_v56 }
 0x4ad   :  { %630 = vadd.xlane.f32.xlu0 %v629_v59 }
 0x4ae   :  { %2521 = vmatmul.mubr.msk.bf16.gmra.mrb[28].mxu0 %vm588_vm5, %v636_v61 }
 0x4af   :  { %2524 = vmatprep.mubr.msk.bf16.mxu0 %vm2849_vm0, %v2848_v1 }
 0x4b1   :  { %v2737_v63 = vpop.eup %2736 }
 0x4b2   :  { %v632_v0 = vsel %vm601_vm6, %v2737_v63, 0.0  ;;  %v637_v60 = vpack.c.bf16 %v2737_v63, %v2737_v63 }
 0x4b3   :  { %633 = vadd.xlane.f32.xlu1 %v632_v0 }
 0x4b6   :  { %2525 = vmatmul.mubr.msk.bf16.gmra.mrb[32].mxu0 %vm588_vm5, %v637_v60 }
 0x4b7   :  { %2548 = vmatprep.mubr.msk.bf16.mxu0 %vm2849_vm0, %v2848_v1 }
 0x530   :  { %v622_v3 = vpop.xlane.xlu1 %621 }
 0x531   :  { %2738 = vrcp.f32 %v622_v3 }
 0x532   :  { %v625_v4 = vpop.xlane.xlu0 %624 }
 0x533   :  { %2740 = vrcp.f32 %v625_v4 }
 0x538   :  { %v628_v52 = vpop.xlane.xlu1 %627 }
 0x539   :  { %2742 = vrcp.f32 %v628_v52 }
 0x53a   :  { %v631_v5 = vpop.xlane.xlu0 %630 }
 0x53b   :  { %2744 = vrcp.f32 %v631_v5  ;;  %v2739_v7 = vpop.eup %2738 }
 0x53d   :  { %v2741_v9 = vpop.eup %2740 }
 0x540   :  { %v634_v11 = vpop.xlane.xlu1 %633 }
 0x541   :  { %2746 = vrcp.f32 %v634_v11 }
 0x543   :  { %v2743_v19 = vpop.eup %2742 }
 0x545   :  { %v2745_v21 = vpop.eup %2744 }
 0x54b   :  { %v2747_v29 = vpop.eup %2746 }
 0x579   :  { %v685_v6 = vpop.f32.mrb[24].mxu0 }
 0x57a   :  { %v2518_v8 = vpop.f32.mrb[25].mxu0  ;;  %v712_v12 = vmul.f32 %v2739_v7, %v685_v6 }
 0x57b   :  { %v688_v10 = vpop.f32.mrb[26].mxu0 }
 0x57c   :  { %v713_v13 = vmul.f32 %v2741_v9, %v688_v10  ;;  %v2519_v14 = vpop.f32.mrb[27].mxu0 }
 0x57e   :  { %v723_v16 = vpack.c.bf16 %v713_v13, %v712_v12 }
 0x580   :  { %2533 = vmatmul.mubr.msk.bf16.vlgmr.msra.gmra.mrb[36].mxu1 %vm162_vm2, %v723_v16 }
 0x581   :  { %v693_v17 = vpop.f32.mrb[28].mxu0  ;;  %2536 = vmatprep.mubr.msk.bf16.mxu1 %vm2849_vm0, %v2848_v1 }
 0x582   :  { %v2522_v20 = vpop.f32.mrb[29].mxu0  ;;  %v714_v23 = vmul.f32 %v2743_v19, %v693_v17 }
 0x583   :  { %v696_v22 = vpop.f32.mrb[30].mxu0 }
 0x584   :  { %v715_v24 = vmul.f32 %v2745_v21, %v696_v22  ;;  %v2523_v26 = vpop.f32.mrb[31].mxu0 }
 0x585   :  { %v2697_v26 = vld [vmem:[%s3572_s1 + $0x48] sm:$0xff]  }
 0x586   :  { %v724_v27 = vpack.c.bf16 %v715_v24, %v714_v23  ;;  %v2696_v24 = vld [vmem:[%s3572_s1 + $0x40] sm:$0xff]  }
 0x587   :  { %2545 = vmatpush3.bf16.msra.mxu0 %v2696_v24 }
 0x588   :  { %2537 = vmatmul.mubr.msk.bf16.gmra.mrb[40].mxu1 %vm162_vm2, %v724_v27  ;;  %2546 = vmatprep.subr.bf16.mxu0 %v2848_v1 }
 0x589   :  { %v701_v30 = vpop.f32.mrb[32].mxu0  ;;  %2540 = vmatprep.mubr.msk.bf16.mxu1 %vm2849_vm0, %v2848_v1 }
 0x58a   :  { %v716_v31 = vmul.f32 %v2747_v29, %v701_v30  ;;  %v2526_v32 = vpop.f32.mrb[33].mxu0 }
 0x58b   :  { %v704_v33 = vpop.f32.mrb[34].mxu0  ;;  %2547 = vmatpush3.bf16.msra.mxu0 %v2697_v26 }
 0x58c   :  { %v2527_v35 = vpop.f32.mrb[35].mxu0  ;;  %v725_v36 = vpack.c.bf16 %v716_v31, %v716_v31  ;;  %2588 = vmatprep.subr.bf16.mxu0 %v2848_v1 }
 0x590   :  { %2541 = vmatmul.mubr.msk.bf16.gmra.mrb[44].mxu1 %vm162_vm2, %v725_v36 }
 0x591   :  { %2576 = vmatprep.mubr.msk.bf16.mxu1 %vm2849_vm0, %v2848_v1 }
 0x653   :  { %v785_v38 = vpop.f32.mrb[36].mxu1 }
 0x654   :  { %v786_v39 = vadd.f32 %v2245_v37, %v785_v38  ;;  %v2534_v40 = vpop.f32.mrb[37].mxu1 }
 0x655   :  { %v788_v41 = vpop.f32.mrb[38].mxu1 }
 0x656   :  { %v3141_v42 = vadd.f32 %v786_v39, %v2941_v15  ;;  %v789_v43 = vadd.f32 %v2245_v37, %v788_v41  ;;  %v2535_v44 = vpop.f32.mrb[39].mxu1 }
 0x658   :  { %v3144_v45 = vadd.f32 %v789_v43, %v2943_v18  ;;  %v812_v46 = vsel %vm162_vm2, %v3141_v42, 0.0  ;;  %v2251_v43 = vld [vmem:[%s3574_s3 + $0x6] ss:$0 sm:$0xff] }
 0x659   :  { %813 = vadd.xlane.f32.xlu0 %v812_v46 }
 0x65a   :  { %v815_v47 = vsel %vm162_vm2, %v3144_v45, 0.0 }
 0x65b   :  { %816 = vadd.xlane.f32.xlu1 %v815_v47  ;;  %v793_v48 = vpop.f32.mrb[40].mxu1 }
 0x65c   :  { %v794_v49 = vadd.f32 %v2245_v37, %v793_v48  ;;  %v2538_v50 = vpop.f32.mrb[41].mxu1 }
 0x65d   :  { %v796_v51 = vpop.f32.mrb[42].mxu1 }
 0x65e   :  { %v3151_v15 = vadd.f32 %v794_v49, %v2955_v25  ;;  %v797_v53 = vadd.f32 %v2245_v37, %v796_v51  ;;  %v2539_v54 = vpop.f32.mrb[43].mxu1  ;;  %v2252_v51 = vld [vmem:[%s3574_s3 + $0x7] ss:$0 sm:$0xff] }
 0x660   :  { %v3154_v18 = vadd.f32 %v797_v53, %v2957_v28  ;;  %v818_v55 = vsel %vm162_vm2, %v3151_v15, 0.0 }
 0x661   :  { %819 = vadd.xlane.f32.xlu0 %v818_v55 }
 0x662   :  { %v821_v56 = vsel %vm162_vm2, %v3154_v18, 0.0 }
 0x663   :  { %822 = vadd.xlane.f32.xlu1 %v821_v56  ;;  %v801_v57 = vpop.f32.mrb[44].mxu1 }
 0x664   :  { %v802_v58 = vadd.f32 %v2245_v37, %v801_v57  ;;  %v2542_v59 = vpop.f32.mrb[45].mxu1 }
 0x665   :  { %v804_v61 = vpop.f32.mrb[46].mxu1 }
 0x666   :  { %v3161_v25 = vadd.f32 %v802_v58, %v2966_v34  ;;  %v2543_v63 = vpop.f32.mrb[47].mxu1 }
 0x668   :  { %v824_v28 = vsel %vm175_vm3, %v3161_v25, 0.0 }
 0x669   :  { %825 = vadd.xlane.f32.xlu0 %v824_v28 }
 0x6e6   :  { %v814_v0 = vpop.xlane.xlu0 %813 }
 0x6e7   :  { %v827_v60 = vmul.f32 0.03125, %v814_v0 }
 0x6e8   :  { %v817_v62 = vpop.xlane.xlu1 %816 }
 0x6e9   :  { %v832_v2 = vsub.f32 %v3141_v42, %v827_v60  ;;  %v828_v3 = vmul.f32 0.03125, %v817_v62 }
 0x6eb   :  { %v833_v4 = vsub.f32 %v3144_v45, %v828_v3  ;;  %v837_v52 = vmul.f32 %v832_v2, %v832_v2 }
 0x6ed   :  { %v842_v5 = vsel %vm162_vm2, %v837_v52, 0.0  ;;  %v838_v6 = vmul.f32 %v833_v4, %v833_v4 }
 0x6ee   :  { %843 = vadd.xlane.f32.xlu1 %v842_v5  ;;  %v820_v34 = vpop.xlane.xlu0 %819 }
 0x6ef   :  { %v829_v7 = vmul.f32 0.03125, %v820_v34  ;;  %v845_v8 = vsel %vm162_vm2, %v838_v6, 0.0  ;;  %v2698_v34 = vld [vmem:[%s3573_s2 + $0x18] sm:$0xff]  }
 0x6f0   :  { %v823_v9 = vpop.xlane.xlu1 %822  ;;  %846 = vadd.xlane.f32.xlu0 %v845_v8  ;;  %2561 = vmatpush3.bf16.msra.mxu1 %v2698_v34  ;;  %v2700_v8 = vld [vmem:[%s3573_s2 + $0x28] sm:$0xff]  }
 0x6f1   :  { %v834_v10 = vsub.f32 %v3151_v15, %v829_v7  ;;  %v830_v11 = vmul.f32 0.03125, %v823_v9  ;;  %2562 = vmatprep.subr.bf16.mxu1 %v2848_v1  ;;  %v2699_v7 = vld [vmem:[%s3573_s2 + $0x20] sm:$0xff]   ;;  %v2701_v9 = vld [vmem:[%s3573_s2 + $0x30] sm:$0xff]  }
 0x6f3   :  { %v835_v12 = vsub.f32 %v3154_v18, %v830_v11  ;;  %v839_v13 = vmul.f32 %v834_v10, %v834_v10  ;;  %v2703_v11 = vld [vmem:[%s3573_s2 + $0x40] sm:$0xff]  }
 0x6f4   :  { %2563 = vmatpush3.bf16.msra.mxu1 %v2699_v7 }
 0x6f5   :  { %v848_v14 = vsel %vm162_vm2, %v839_v13, 0.0  ;;  %v840_v16 = vmul.f32 %v835_v12, %v835_v12  ;;  %2564 = vmatprep.subr.bf16.mxu1 %v2848_v1  ;;  %v2705_v13 = vld [vmem:[%s3573_s2 + $0x50] sm:$0xff]  }
 0x6f6   :  { %849 = vadd.xlane.f32.xlu1 %v848_v14  ;;  %v826_v17 = vpop.xlane.xlu0 %825  ;;  %v2257_v14 = vld [vmem:[%s3575_s4] ss:$0 sm:$0xff] }
 0x6f7   :  { %v831_v19 = vmul.f32 0.03125, %v826_v17  ;;  %v851_v20 = vsel %vm162_vm2, %v840_v16, 0.0 }
 0x6f8   :  { %852 = vadd.xlane.f32.xlu0 %v851_v20  ;;  %2565 = vmatpush3.bf16.msra.mxu1 %v2700_v8 }
 0x6f9   :  { %v836_v21 = vsub.f32 %v3161_v25, %v831_v19  ;;  %2566 = vmatprep.subr.bf16.mxu1 %v2848_v1 }
 0x6fb   :  { %v841_v22 = vmul.f32 %v836_v21, %v836_v21 }
 0x6fc   :  { %2567 = vmatpush3.bf16.msra.mxu1 %v2701_v9 }
 0x6fd   :  { %v854_v23 = vsel %vm175_vm3, %v841_v22, 0.0  ;;  %2568 = vmatprep.subr.bf16.mxu1 %v2848_v1 }
 0x6fe   :  { %855 = vadd.xlane.f32.xlu1 %v854_v23 }
 0x77b   :  { %v844_v27 = vpop.xlane.xlu1 %843 }
 0x77c   :  { %v857_v29 = vmul.f32 0.03125, %v844_v27 }
 0x77d   :  { %v847_v30 = vpop.xlane.xlu0 %846 }
 0x77e   :  { %v862_v31 = vadd.f32 1e-06, %v857_v29  ;;  %v858_v32 = vmul.f32 0.03125, %v847_v30 }
 0x780   :  { %2748 = vrsqrt.f32 %v862_v31  ;;  %v863_v33 = vadd.f32 1e-06, %v858_v32 }
 0x782   :  { %2750 = vrsqrt.f32 %v863_v33 }
 0x783   :  { %v850_v35 = vpop.xlane.xlu1 %849 }
 0x784   :  { %v859_v36 = vmul.f32 0.03125, %v850_v35 }
 0x785   :  { %v853_v37 = vpop.xlane.xlu0 %852 }
 0x786   :  { %v864_v38 = vadd.f32 1e-06, %v859_v36  ;;  %v860_v39 = vmul.f32 0.03125, %v853_v37 }
 0x788   :  { %2752 = vrsqrt.f32 %v864_v38  ;;  %v865_v40 = vadd.f32 1e-06, %v860_v39 }
 0x78a   :  { %v2749_v41 = vpop.eup %2748  ;;  %2754 = vrsqrt.f32 %v865_v40 }
 0x78b   :  { %v872_v44 = vmul.f32 %v2749_v41, %v832_v2  ;;  %v856_v46 = vpop.xlane.xlu1 %855 }
 0x78c   :  { %v2751_v47 = vpop.eup %2750  ;;  %v861_v48 = vmul.f32 0.03125, %v856_v46 }
 0x78d   :  { %v882_v49 = vmul.f32 %v2251_v43, %v872_v44  ;;  %v873_v50 = vmul.f32 %v2751_v47, %v833_v4 }
 0x78e   :  { %v866_v53 = vadd.f32 1e-06, %v861_v48 }
 0x78f   :  { %v883_v54 = vmul.f32 %v2251_v43, %v873_v50  ;;  %v892_v55 = vadd.f32 %v2252_v51, %v882_v49 }
 0x790   :  { %2756 = vrsqrt.f32 %v866_v53 }
 0x791   :  { %v893_v56 = vadd.f32 %v2252_v51, %v883_v54 }
 0x792   :  { %v2753_v57 = vpop.eup %2752 }
 0x793   :  { %v874_v58 = vmul.f32 %v2753_v57, %v834_v10  ;;  %v902_v59 = vpack.c.bf16 %v893_v56, %v892_v55  ;;  %v2702_v10 = vld [vmem:[%s3573_s2 + $0x38] sm:$0xff]  }
 0x794   :  { %v2755_v61 = vpop.eup %2754  ;;  %2569 = vmatpush3.bf16.msra.mxu1 %v2702_v10 }
 0x795   :  { %v875_v63 = vmul.f32 %v2755_v61, %v835_v12  ;;  %2549 = vmatmul.mubr.msk.bf16.vlgmr.msra.gmra.mrb[36].mxu0 %vm162_vm2, %v902_v59  ;;  %v884_v28 = vmul.f32 %v2251_v43, %v874_v58  ;;  %2570 = vmatprep.subr.bf16.mxu1 %v2848_v1  ;;  %v2704_v12 = vld [vmem:[%s3573_s2 + $0x48] sm:$0xff]  }
 0x796   :  { %2552 = vmatprep.mubr.msk.bf16.mxu0 %vm2849_vm0, %v2848_v1 }
 0x797   :  { %v885_v0 = vmul.f32 %v2251_v43, %v875_v63  ;;  %v894_v60 = vadd.f32 %v2252_v51, %v884_v28 }
 0x798   :  { %2571 = vmatpush3.bf16.msra.mxu1 %v2703_v11 }
 0x799   :  { %v895_v62 = vadd.f32 %v2252_v51, %v885_v0  ;;  %2572 = vmatprep.subr.bf16.mxu1 %v2848_v1 }
 0x79a   :  { %v2757_v2 = vpop.eup %2756 }
 0x79b   :  { %v903_v3 = vpack.c.bf16 %v895_v62, %v894_v60  ;;  %v876_v4 = vmul.f32 %v2757_v2, %v836_v21 }
 0x79c   :  { %2573 = vmatpush3.bf16.msra.mxu1 %v2704_v12 }
 0x79d   :  { %2553 = vmatmul.mubr.msk.bf16.gmra.mrb[40].mxu0 %vm162_vm2, %v903_v3  ;;  %v886_v52 = vmul.f32 %v2251_v43, %v876_v4  ;;  %2574 = vmatprep.subr.bf16.mxu1 %v2848_v1 }
 0x79e   :  { %2556 = vmatprep.mubr.msk.bf16.mxu0 %vm2849_vm0, %v2848_v1 }
 0x79f   :  { %v896_v5 = vadd.f32 %v2252_v51, %v886_v52 }
 0x7a0   :  { %2575 = vmatpush3.bf16.msra.mxu1 %v2705_v13 }
 0x7a1   :  { %v904_v6 = vpack.c.bf16 %v896_v5, %v896_v5  ;;  %2612 = vmatprep.subr.bf16.mxu1 %v2848_v1 }
 0x7a5   :  { %2557 = vmatmul.mubr.msk.bf16.gmra.mrb[44].mxu0 %vm162_vm2, %v904_v6 }
 0x7a6   :  { %2592 = vmatprep.mubr.msk.bf16.mxu0 %vm2849_vm0, %v2848_v1 }
 0x868   :  { %v964_v16 = vpop.f32.mrb[36].mxu0 }
 0x869   :  { %v965_v17 = vadd.f32 %v2257_v14, %v964_v16  ;;  %v2550_v19 = vpop.f32.mrb[37].mxu0 }
 0x86a   :  { %v967_v20 = vpop.f32.mrb[38].mxu0 }
 0x86b   :  { %v986_v21 = vmul.f32 %v965_v17, %v965_v17  ;;  %v968_v22 = vadd.f32 %v2257_v14, %v967_v20  ;;  %v2551_v23 = vpop.f32.mrb[39].mxu0 }
 0x86d   :  { %v991_v24 = vmul.f32 %v986_v21, %v965_v17  ;;  %v987_v26 = vmul.f32 %v968_v22, %v968_v22 }
 0x86f   :  { %v996_v27 = vmul.f32 0.044715, %v991_v24  ;;  %v992_v29 = vmul.f32 %v987_v26, %v968_v22  ;;  %v2263_v24 = vld [vmem:[%s3574_s3 + $0x8] ss:$0 sm:$0xff] }
 0x870   :  { %v972_v30 = vpop.f32.mrb[40].mxu0 }
 0x871   :  { %v1001_v31 = vadd.f32 %v996_v27, %v965_v17  ;;  %v997_v32 = vmul.f32 0.044715, %v992_v29  ;;  %v973_v33 = vadd.f32 %v2257_v14, %v972_v30  ;;  %v2554_v35 = vpop.f32.mrb[41].mxu0 }
 0x872   :  { %v975_v36 = vpop.f32.mrb[42].mxu0 }
 0x873   :  { %v1006_v37 = vmul.f32 0.7978846, %v1001_v31  ;;  %v1002_v38 = vadd.f32 %v997_v32, %v968_v22  ;;  %v988_v39 = vmul.f32 %v973_v33, %v973_v33  ;;  %v976_v40 = vadd.f32 %v2257_v14, %v975_v36  ;;  %v2555_v41 = vpop.f32.mrb[43].mxu0 }
 0x875   :  { %2758 = vtanh.f32 %v1006_v37  ;;  %v1007_v43 = vmul.f32 0.7978846, %v1002_v38  ;;  %v993_v44 = vmul.f32 %v988_v39, %v973_v33  ;;  %v989_v46 = vmul.f32 %v976_v40, %v976_v40 }
 0x877   :  { %2760 = vtanh.f32 %v1007_v43  ;;  %v998_v47 = vmul.f32 0.044715, %v993_v44  ;;  %v994_v48 = vmul.f32 %v989_v46, %v976_v40 }
 0x878   :  { %v980_v49 = vpop.f32.mrb[44].mxu0 }
 0x879   :  { %v1003_v50 = vadd.f32 %v998_v47, %v973_v33  ;;  %v999_v51 = vmul.f32 0.044715, %v994_v48  ;;  %v981_v53 = vadd.f32 %v2257_v14, %v980_v49  ;;  %v2558_v54 = vpop.f32.mrb[45].mxu0 }
 0x87a   :  { %v983_v55 = vpop.f32.mrb[46].mxu0 }
 0x87b   :  { %v1008_v56 = vmul.f32 0.7978846, %v1003_v50  ;;  %v1004_v57 = vadd.f32 %v999_v51, %v976_v40  ;;  %v990_v58 = vmul.f32 %v981_v53, %v981_v53  ;;  %v2559_v59 = vpop.f32.mrb[47].mxu0 }
 0x87d   :  { %2762 = vtanh.f32 %v1008_v56  ;;  %v1009_v61 = vmul.f32 0.7978846, %v1004_v57  ;;  %v995_v63 = vmul.f32 %v990_v58, %v981_v53 }
 0x87f   :  { %v2759_v28 = vpop.eup %2758  ;;  %2764 = vtanh.f32 %v1009_v61  ;;  %v1000_v0 = vmul.f32 0.044715, %v995_v63 }
 0x880   :  { %v1016_v60 = vadd.f32 1.0, %v2759_v28 }
 0x881   :  { %v2761_v62 = vpop.eup %2760  ;;  %v1005_v2 = vadd.f32 %v1000_v0, %v981_v53 }
 0x882   :  { %v1021_v3 = vmul.f32 0.5, %v1016_v60  ;;  %v1017_v4 = vadd.f32 1.0, %v2761_v62 }
 0x883   :  { %v1010_v52 = vmul.f32 0.7978846, %v1005_v2 }
 0x884   :  { %v1022_v5 = vmul.f32 0.5, %v1017_v4  ;;  %v1026_v6 = vmul.f32 %v1021_v3, %v965_v17 }
 0x885   :  { %2766 = vtanh.f32 %v1010_v52 }
 0x886   :  { %v1027_v34 = vmul.f32 %v1022_v5, %v968_v22 }
 0x887   :  { %v2763_v7 = vpop.eup %2762 }
 0x888   :  { %v1032_v8 = vpack.c.bf16 %v1027_v34, %v1026_v6  ;;  %v1018_v9 = vadd.f32 1.0, %v2763_v7 }
 0x889   :  { %v2765_v10 = vpop.eup %2764 }
 0x88a   :  { %2577 = vmatmul.mubr.bf16.vlgmr.msra.gmra.mrb[48].mxu1 %v1032_v8  ;;  %v1019_v11 = vadd.f32 1.0, %v2765_v10  ;;  %v1023_v12 = vmul.f32 0.5, %v1018_v9 }
 0x88b   :  { %2580 = vmatprep.mubr.msk.bf16.mxu1 %vm2849_vm0, %v2848_v1 }
 0x88c   :  { %v1024_v13 = vmul.f32 0.5, %v1019_v11  ;;  %v1028_v14 = vmul.f32 %v1023_v12, %v973_v33  ;;  %v2706_v12 = vld [vmem:[%s3572_s1 + $0x50] sm:$0xff]  }
 0x88d   :  { %2589 = vmatpush3.bf16.msra.mxu0 %v2706_v12 }
 0x88e   :  { %v1029_v16 = vmul.f32 %v1024_v13, %v976_v40  ;;  %2590 = vmatprep.subr.bf16.mxu0 %v2848_v1  ;;  %v2707_v13 = vld [vmem:[%s3572_s1 + $0x58] sm:$0xff]  }
 0x88f   :  { %v2767_v19 = vpop.eup %2766 }
 0x890   :  { %v1033_v20 = vpack.c.bf16 %v1029_v16, %v1028_v14  ;;  %v1020_v21 = vadd.f32 1.0, %v2767_v19 }
 0x891   :  { %2591 = vmatpush3.bf16.msra.mxu0 %v2707_v13 }
 0x892   :  { %2581 = vmatmul.mubr.bf16.gmra.mrb[52].mxu1 %v1033_v20  ;;  %v1025_v23 = vmul.f32 0.5, %v1020_v21  ;;  %2604 = vmatprep.subr.bf16.mxu0 %v2848_v1 }
 0x893   :  { %2584 = vmatprep.mubr.msk.bf16.mxu1 %vm2849_vm0, %v2848_v1 }
 0x894   :  { %v1030_v17 = vmul.f32 %v1025_v23, %v981_v53 }
 0x896   :  { %v1034_v22 = vpack.c.bf16 %v1030_v17, %v1030_v17 }
 0x89a   :  { %2585 = vmatmul.mubr.bf16.gmra.mrb[56].mxu1 %v1034_v22 }
 0x89b   :  { %2616 = vmatprep.mubr.msk.bf16.mxu1 %vm2849_vm0, %v2848_v1 }
 0x95d   :  { %v1121_v26 = vpop.f32.mrb[48].mxu1 }
 0x95e   :  { %v1122_v27 = vadd.f32 %v2263_v24, %v1121_v26  ;;  %v2578_v29 = vpop.f32.mrb[49].mxu1 }
 0x95f   :  { %v1124_v30 = vpop.f32.mrb[50].mxu1 }
 0x960   :  { %v1125_v31 = vadd.f32 %v2263_v24, %v1124_v30  ;;  %v2579_v32 = vpop.f32.mrb[51].mxu1  ;;  %v1143_v33 = vadd.f32 %v1122_v27, %v3141_v42 }
 0x962   :  { %v1148_v35 = vsel %vm162_vm2, %v1143_v33, 0.0  ;;  %v1144_v36 = vadd.f32 %v1125_v31, %v3144_v45  ;;  %v2272_v31 = vld [vmem:[%s3574_s3 + $0x9] ss:$0 sm:$0xff] }
 0x963   :  { %1149 = vadd.xlane.f32.xlu0 %v1148_v35 }
 0x964   :  { %v1151_v37 = vsel %vm162_vm2, %v1144_v36, 0.0 }
 0x965   :  { %1152 = vadd.xlane.f32.xlu1 %v1151_v37  ;;  %v1129_v38 = vpop.f32.mrb[52].mxu1 }
 0x966   :  { %v1130_v39 = vadd.f32 %v2263_v24, %v1129_v38  ;;  %v2582_v40 = vpop.f32.mrb[53].mxu1 }
 0x967   :  { %v1132_v41 = vpop.f32.mrb[54].mxu1 }
 0x968   :  { %v1133_v43 = vadd.f32 %v2263_v24, %v1132_v41  ;;  %v2583_v44 = vpop.f32.mrb[55].mxu1  ;;  %v1145_v46 = vadd.f32 %v1130_v39, %v3151_v15  ;;  %v3274_v41 = vld [vmem:[%s3574_s3 + $0x48] sm:$0xff] }
 0x96a   :  { %v1154_v47 = vsel %vm162_vm2, %v1145_v46, 0.0  ;;  %v1146_v42 = vadd.f32 %v1133_v43, %v3154_v18 }
 0x96b   :  { %1155 = vadd.xlane.f32.xlu0 %v1154_v47 }
 0x96c   :  { %v1157_v48 = vsel %vm162_vm2, %v1146_v42, 0.0 }
 0x96d   :  { %1158 = vadd.xlane.f32.xlu1 %v1157_v48  ;;  %v1137_v45 = vpop.f32.mrb[56].mxu1 }
 0x96e   :  { %v1138_v49 = vadd.f32 %v2263_v24, %v1137_v45  ;;  %v2586_v50 = vpop.f32.mrb[57].mxu1 }
 0x96f   :  { %v1140_v51 = vpop.f32.mrb[58].mxu1 }
 0x970   :  { %v2587_v53 = vpop.f32.mrb[59].mxu1  ;;  %v1147_v54 = vadd.f32 %v1138_v49, %v3161_v25 }
 0x972   :  { %v1160_v55 = vsel %vm175_vm3, %v1147_v54, 0.0 }
 0x973   :  { %1161 = vadd.xlane.f32.xlu0 %v1160_v55  ;;  %v3297_v55 = vld [vmem:[%s3574_s3 + $0x58] sm:$0xff] }
 0x9f0   :  { %v1150_v56 = vpop.xlane.xlu0 %1149 }
 0x9f1   :  { %v1163_v15 = vmul.f32 0.03125, %v1150_v56 }
 0x9f2   :  { %v1153_v57 = vpop.xlane.xlu1 %1152 }
 0x9f3   :  { %v1168_v58 = vsub.f32 %v1143_v33, %v1163_v15  ;;  %v1164_v59 = vmul.f32 0.03125, %v1153_v57  ;;  %v3302_v57 = vld [vmem:[%s3574_s3 + $0x60] sm:$0xff] }
 0x9f5   :  { %v1169_v18 = vsub.f32 %v1144_v36, %v1164_v59  ;;  %v1173_v61 = vmul.f32 %v1168_v58, %v1168_v58  ;;  %v2273_v36 = vld [vmem:[%s3574_s3 + $0xa] ss:$0 sm:$0xff] }
 0x9f7   :  { %v1178_v63 = vsel %vm162_vm2, %v1173_v61, 0.0  ;;  %v1174_v28 = vmul.f32 %v1169_v18, %v1169_v18 }
 0x9f8   :  { %1179 = vadd.xlane.f32.xlu1 %v1178_v63  ;;  %v1156_v0 = vpop.xlane.xlu0 %1155 }
 0x9f9   :  { %v1165_v60 = vmul.f32 0.03125, %v1156_v0  ;;  %v1181_v62 = vsel %vm162_vm2, %v1174_v28, 0.0 }
 0x9fa   :  { %v1159_v2 = vpop.xlane.xlu1 %1158  ;;  %1182 = vadd.xlane.f32.xlu0 %v1181_v62 }
 0x9fb   :  { %v1170_v25 = vsub.f32 %v1145_v46, %v1165_v60  ;;  %v1166_v3 = vmul.f32 0.03125, %v1159_v2  ;;  %v3279_v46 = vld [vmem:[%s3574_s3 + $0x50] sm:$0xff]  ;;  %v3320_v60 = vld [vmem:[%s3574_s3 + $0x68] sm:$0x3] }
 0x9fd   :  { %v1171_v4 = vsub.f32 %v1146_v42, %v1166_v3  ;;  %v1175_v52 = vmul.f32 %v1170_v25, %v1170_v25  ;;  %v2278_v3 = vld [vmem:[%s3574_s3 + $0xb] ss:$0 sm:$0xff] }
 0x9ff   :  { %v1184_v5 = vsel %vm162_vm2, %v1175_v52, 0.0  ;;  %v1176_v6 = vmul.f32 %v1171_v4, %v1171_v4 }
 0xa00   :  { %1185 = vadd.xlane.f32.xlu1 %v1184_v5  ;;  %v1162_v34 = vpop.xlane.xlu0 %1161 }
 0xa01   :  { %v1167_v7 = vmul.f32 0.03125, %v1162_v34  ;;  %v1187_v8 = vsel %vm162_vm2, %v1176_v6, 0.0 }
 0xa02   :  { %1188 = vadd.xlane.f32.xlu0 %v1187_v8 }
 0xa03   :  { %v1172_v9 = vsub.f32 %v1147_v54, %v1167_v7 }
 0xa05   :  { %v1177_v10 = vmul.f32 %v1172_v9, %v1172_v9 }
 0xa07   :  { %v1190_v11 = vsel %vm175_vm3, %v1177_v10, 0.0 }
 0xa08   :  { %1191 = vadd.xlane.f32.xlu1 %v1190_v11 }
 0xa85   :  { %v1180_v14 = vpop.xlane.xlu1 %1179 }
 0xa86   :  { %v1193_v16 = vmul.f32 0.03125, %v1180_v14 }
 0xa87   :  { %v1183_v19 = vpop.xlane.xlu0 %1182 }
 0xa88   :  { %v1198_v20 = vadd.f32 1e-06, %v1193_v16  ;;  %v1194_v21 = vmul.f32 0.03125, %v1183_v19 }
 0xa8a   :  { %2768 = vrsqrt.f32 %v1198_v20  ;;  %v1199_v23 = vadd.f32 1e-06, %v1194_v21 }
 0xa8c   :  { %2770 = vrsqrt.f32 %v1199_v23 }
 0xa8d   :  { %v1186_v17 = vpop.xlane.xlu1 %1185 }
 0xa8e   :  { %v1195_v22 = vmul.f32 0.03125, %v1186_v17 }
 0xa8f   :  { %v1189_v24 = vpop.xlane.xlu0 %1188 }
 0xa90   :  { %v1200_v26 = vadd.f32 1e-06, %v1195_v22  ;;  %v1196_v27 = vmul.f32 0.03125, %v1189_v24 }
 0xa92   :  { %2772 = vrsqrt.f32 %v1200_v26  ;;  %v1201_v29 = vadd.f32 1e-06, %v1196_v27 }
 0xa94   :  { %v2769_v30 = vpop.eup %2768  ;;  %2774 = vrsqrt.f32 %v1201_v29 }
 0xa95   :  { %v1208_v32 = vmul.f32 %v2769_v30, %v1168_v58  ;;  %v1192_v33 = vpop.xlane.xlu1 %1191 }
 0xa96   :  { %v2771_v35 = vpop.eup %2770  ;;  %v1197_v37 = vmul.f32 0.03125, %v1192_v33 }
 0xa97   :  { %v1218_v38 = vmul.f32 %v2272_v31, %v1208_v32  ;;  %v1209_v39 = vmul.f32 %v2771_v35, %v1169_v18 }
 0xa98   :  { %v1202_v40 = vadd.f32 1e-06, %v1197_v37 }
 0xa99   :  { %v1228_v43 = vadd.f32 %v2273_v36, %v1218_v38  ;;  %v1219_v44 = vmul.f32 %v2272_v31, %v1209_v39 }
 0xa9a   :  { %2776 = vrsqrt.f32 %v1202_v40 }
 0xa9b   :  { %v1229_v47 = vadd.f32 %v2273_v36, %v1219_v44  ;;  %v1233_v42 = vadd.f32 %v1228_v43, %v3274_v41 }
 0xa9c   :  { %v2773_v48 = vpop.eup %2772 }
 0xa9d   :  { %v1210_v45 = vmul.f32 %v2773_v48, %v1170_v25  ;;  %v1249_v49 = vpack.c.bf16 %v1229_v47, %v1228_v43  ;;  %1238 = vst.msk [vmem:[%s3577_s6] sm:$0xff] %vm162_vm2, %v1233_v42  ;;  %v1234_v50 = vadd.f32 %v1229_v47, %v3279_v46 }
 0xa9e   :  { %v2775_v51 = vpop.eup %2774 }
 0xa9f   :  { %v1211_v53 = vmul.f32 %v2775_v51, %v1171_v4  ;;  %2593 = vmatmul.mubr.msk.bf16.vlgmr.msra.gmra.mrb[48].mxu0 %vm162_vm2, %v1249_v49  ;;  %v1220_v54 = vmul.f32 %v2272_v31, %v1210_v45  ;;  %1239 = vst.msk [vmem:[%s3577_s6 + $0x8] sm:$0xff] %vm162_vm2, %v1234_v50 }
 0xaa0   :  { %2596 = vmatprep.mubr.msk.bf16.mxu0 %vm2849_vm0, %v2848_v1 }
 0xaa1   :  { %v1221_v56 = vmul.f32 %v2272_v31, %v1211_v53  ;;  %v1230_v15 = vadd.f32 %v2273_v36, %v1220_v54 }
 0xaa3   :  { %v1231_v58 = vadd.f32 %v2273_v36, %v1221_v56  ;;  %v1235_v59 = vadd.f32 %v1230_v15, %v3297_v55 }
 0xaa4   :  { %v2777_v18 = vpop.eup %2776 }
 0xaa5   :  { %v1212_v61 = vmul.f32 %v2777_v18, %v1172_v9  ;;  %v1250_v63 = vpack.c.bf16 %v1231_v58, %v1230_v15  ;;  %1240 = vst.msk [vmem:[%s3577_s6 + $0x10] sm:$0xff] %vm162_vm2, %v1235_v59  ;;  %v1236_v28 = vadd.f32 %v1231_v58, %v3302_v57 }
 0xaa7   :  { %2597 = vmatmul.mubr.msk.bf16.gmra.mrb[52].mxu0 %vm162_vm2, %v1250_v63  ;;  %v1222_v0 = vmul.f32 %v2272_v31, %v1212_v61  ;;  %1241 = vst.msk [vmem:[%s3577_s6 + $0x18] sm:$0xff] %vm162_vm2, %v1236_v28 }
 0xaa8   :  { %2600 = vmatprep.mubr.msk.bf16.mxu0 %vm2849_vm0, %v2848_v1 }
 0xaa9   :  { %v1232_v62 = vadd.f32 %v2273_v36, %v1222_v0 }
 0xaab   :  { %v1237_v2 = vadd.f32 %v1232_v62, %v3320_v60  ;;  %v1251_v25 = vpack.c.bf16 %v1232_v62, %v1232_v62 }
 0xaad   :  { %1242 = vst.msk [vmem:[%s3577_s6 + $0x20] sm:$0x3] %vm175_vm3, %v1237_v2 }
 0xaaf   :  { %2601 = vmatmul.mubr.msk.bf16.gmra.mrb[56].mxu0 %vm162_vm2, %v1251_v25 }
 0xab0   :  { %2608 = vmatprep.mubr.msk.bf16.mxu0 %vm2849_vm0, %v2848_v1 }
 0xb72   :  { %v1311_v4 = vpop.f32.mrb[48].mxu0 }
 0xb73   :  { %v1312_v52 = vadd.f32 %v2278_v3, %v1311_v4  ;;  %v2594_v5 = vpop.f32.mrb[49].mxu0 }
 0xb74   :  { %v1314_v6 = vpop.f32.mrb[50].mxu0  ;;  %v2284_v5 = vld [vmem:[%s3574_s3 + $0xc] ss:$0 sm:$0xff] }
 0xb75   :  { %v1315_v34 = vadd.f32 %v2278_v3, %v1314_v6  ;;  %v2595_v7 = vpop.f32.mrb[51].mxu0  ;;  %v1333_v8 = vsel %vm162_vm2, %v1312_v52, 0.0 }
 0xb76   :  { %1334 = vadd.xlane.f32.xlu0 %v1333_v8 }
 0xb77   :  { %v1336_v9 = vsel %vm162_vm2, %v1315_v34, 0.0 }
 0xb78   :  { %1337 = vadd.xlane.f32.xlu1 %v1336_v9  ;;  %v2285_v9 = vld [vmem:[%s3574_s3 + $0xd] ss:$0 sm:$0xff] }
 0xb7a   :  { %v1319_v10 = vpop.f32.mrb[52].mxu0 }
 0xb7b   :  { %v1320_v11 = vadd.f32 %v2278_v3, %v1319_v10  ;;  %v2598_v12 = vpop.f32.mrb[53].mxu0 }
 0xb7c   :  { %v1322_v13 = vpop.f32.mrb[54].mxu0 }
 0xb7d   :  { %v1323_v14 = vadd.f32 %v2278_v3, %v1322_v13  ;;  %v2599_v16 = vpop.f32.mrb[55].mxu0  ;;  %v1339_v19 = vsel %vm162_vm2, %v1320_v11, 0.0 }
 0xb7e   :  { %1340 = vadd.xlane.f32.xlu0 %v1339_v19 }
 0xb7f   :  { %v1342_v20 = vsel %vm162_vm2, %v1323_v14, 0.0 }
 0xb80   :  { %1343 = vadd.xlane.f32.xlu1 %v1342_v20 }
 0xb82   :  { %v1327_v21 = vpop.f32.mrb[56].mxu0 }
 0xb83   :  { %v1328_v23 = vadd.f32 %v2278_v3, %v1327_v21  ;;  %v2602_v17 = vpop.f32.mrb[57].mxu0 }
 0xb84   :  { %v1330_v22 = vpop.f32.mrb[58].mxu0 }
 0xb85   :  { %v2603_v24 = vpop.f32.mrb[59].mxu0  ;;  %v1345_v26 = vsel %vm175_vm3, %v1328_v23, 0.0 }
 0xb86   :  { %1346 = vadd.xlane.f32.xlu0 %v1345_v26 }
 0xc03   :  { %v1335_v27 = vpop.xlane.xlu0 %1334 }
 0xc04   :  { %v1348_v29 = vmul.f32 0.03125, %v1335_v27 }
 0xc05   :  { %v1338_v30 = vpop.xlane.xlu1 %1337 }
 0xc06   :  { %v1353_v31 = vsub.f32 %v1312_v52, %v1348_v29  ;;  %v1349_v32 = vmul.f32 0.03125, %v1338_v30 }
 0xc08   :  { %v1354_v33 = vsub.f32 %v1315_v34, %v1349_v32  ;;  %v1358_v35 = vmul.f32 %v1353_v31, %v1353_v31 }
 0xc0a   :  { %v1363_v36 = vsel %vm162_vm2, %v1358_v35, 0.0  ;;  %v1359_v37 = vmul.f32 %v1354_v33, %v1354_v33 }
 0xc0b   :  { %1364 = vadd.xlane.f32.xlu1 %v1363_v36  ;;  %v1341_v38 = vpop.xlane.xlu0 %1340 }
 0xc0c   :  { %v1350_v39 = vmul.f32 0.03125, %v1341_v38  ;;  %v1366_v40 = vsel %vm162_vm2, %v1359_v37, 0.0 }
 0xc0d   :  { %v1344_v43 = vpop.xlane.xlu1 %1343  ;;  %1367 = vadd.xlane.f32.xlu0 %v1366_v40 }
 0xc0e   :  { %v1355_v44 = vsub.f32 %v1320_v11, %v1350_v39  ;;  %v1351_v47 = vmul.f32 0.03125, %v1344_v43 }
 0xc10   :  { %v1356_v42 = vsub.f32 %v1323_v14, %v1351_v47  ;;  %v1360_v48 = vmul.f32 %v1355_v44, %v1355_v44 }
 0xc12   :  { %v1369_v45 = vsel %vm162_vm2, %v1360_v48, 0.0  ;;  %v1361_v49 = vmul.f32 %v1356_v42, %v1356_v42 }
 0xc13   :  { %1370 = vadd.xlane.f32.xlu1 %v1369_v45  ;;  %v1347_v50 = vpop.xlane.xlu0 %1346 }
 0xc14   :  { %v1352_v51 = vmul.f32 0.03125, %v1347_v50  ;;  %v1372_v53 = vsel %vm162_vm2, %v1361_v49, 0.0 }
 0xc15   :  { %1373 = vadd.xlane.f32.xlu0 %v1372_v53 }
 0xc16   :  { %v1357_v54 = vsub.f32 %v1328_v23, %v1352_v51 }
 0xc18   :  { %v1362_v56 = vmul.f32 %v1357_v54, %v1357_v54 }
 0xc1a   :  { %v1375_v15 = vsel %vm175_vm3, %v1362_v56, 0.0 }
 0xc1b   :  { %1376 = vadd.xlane.f32.xlu1 %v1375_v15 }
 0xc98   :  { %v1365_v58 = vpop.xlane.xlu1 %1364 }
 0xc99   :  { %v1378_v59 = vmul.f32 0.03125, %v1365_v58 }
 0xc9a   :  { %v1368_v18 = vpop.xlane.xlu0 %1367 }
 0xc9b   :  { %v1383_v61 = vadd.f32 1e-06, %v1378_v59  ;;  %v1379_v63 = vmul.f32 0.03125, %v1368_v18 }
 0xc9d   :  { %2778 = vrsqrt.f32 %v1383_v61  ;;  %v1384_v28 = vadd.f32 1e-06, %v1379_v63 }
 0xc9f   :  { %2780 = vrsqrt.f32 %v1384_v28 }
 0xca0   :  { %v1371_v0 = vpop.xlane.xlu1 %1370 }
 0xca1   :  { %v1380_v62 = vmul.f32 0.03125, %v1371_v0 }
 0xca2   :  { %v1374_v2 = vpop.xlane.xlu0 %1373 }
 0xca3   :  { %v1385_v25 = vadd.f32 1e-06, %v1380_v62  ;;  %v1381_v3 = vmul.f32 0.03125, %v1374_v2 }
 0xca5   :  { %2782 = vrsqrt.f32 %v1385_v25  ;;  %v1386_v4 = vadd.f32 1e-06, %v1381_v3 }
 0xca7   :  { %v2779_v52 = vpop.eup %2778  ;;  %2784 = vrsqrt.f32 %v1386_v4 }
 0xca8   :  { %v1377_v6 = vpop.xlane.xlu1 %1376  ;;  %v1393_v34 = vmul.f32 %v2779_v52, %v1353_v31 }
 0xca9   :  { %v2781_v7 = vpop.eup %2780  ;;  %v1382_v8 = vmul.f32 0.03125, %v1377_v6 }
 0xcaa   :  { %v1403_v10 = vmul.f32 %v2284_v5, %v1393_v34  ;;  %v1394_v11 = vmul.f32 %v2781_v7, %v1354_v33 }
 0xcab   :  { %v1387_v12 = vadd.f32 1e-06, %v1382_v8 }
 0xcac   :  { %v1413_v13 = vadd.f32 %v2285_v9, %v1403_v10  ;;  %v1404_v14 = vmul.f32 %v2284_v5, %v1394_v11 }
 0xcad   :  { %2786 = vrsqrt.f32 %v1387_v12 }
 0xcae   :  { %v1418_v16 = vadd.f32 %v1413_v13, %v3274_v41  ;;  %v1414_v19 = vadd.f32 %v2285_v9, %v1404_v14  ;;  %v2286_v13 = vld [vmem:[%s3574_s3 + $0xe] ss:$0 sm:$0xff] }
 0xcaf   :  { %v2783_v20 = vpop.eup %2782 }
 0xcb0   :  { %v1423_v21 = vsel %vm162_vm2, %v1418_v16, 0.0  ;;  %v1419_v23 = vadd.f32 %v1414_v19, %v3279_v46  ;;  %v1395_v17 = vmul.f32 %v2783_v20, %v1355_v44 }
 0xcb1   :  { %v2785_v22 = vpop.eup %2784  ;;  %1424 = vadd.xlane.f32.xlu0 %v1423_v21  ;;  %v2287_v21 = vld [vmem:[%s3574_s3 + $0xf] ss:$0 sm:$0xff] }
 0xcb2   :  { %v1426_v24 = vsel %vm162_vm2, %v1419_v23, 0.0  ;;  %v1405_v26 = vmul.f32 %v2284_v5, %v1395_v17  ;;  %v1396_v27 = vmul.f32 %v2785_v22, %v1356_v42 }
 0xcb3   :  { %1427 = vadd.xlane.f32.xlu1 %v1426_v24 }
 0xcb4   :  { %v1415_v29 = vadd.f32 %v2285_v9, %v1405_v26  ;;  %v1406_v30 = vmul.f32 %v2284_v5, %v1396_v27 }
 0xcb6   :  { %v1420_v31 = vadd.f32 %v1415_v29, %v3297_v55  ;;  %v1416_v32 = vadd.f32 %v2285_v9, %v1406_v30 }
 0xcb7   :  { %v2787_v41 = vpop.eup %2786 }
 0xcb8   :  { %v1429_v33 = vsel %vm162_vm2, %v1420_v31, 0.0  ;;  %v1421_v35 = vadd.f32 %v1416_v32, %v3302_v57  ;;  %v1397_v36 = vmul.f32 %v2787_v41, %v1357_v54 }
 0xcb9   :  { %1430 = vadd.xlane.f32.xlu0 %v1429_v33 }
 0xcba   :  { %v1432_v46 = vsel %vm162_vm2, %v1421_v35, 0.0  ;;  %v1407_v37 = vmul.f32 %v2284_v5, %v1397_v36 }
 0xcbb   :  { %1433 = vadd.xlane.f32.xlu1 %v1432_v46 }
 0xcbc   :  { %v1417_v38 = vadd.f32 %v2285_v9, %v1407_v37 }
 0xcbe   :  { %v1422_v39 = vadd.f32 %v1417_v38, %v3320_v60 }
 0xcc0   :  { %v1435_v40 = vsel %vm175_vm3, %v1422_v39, 0.0 }
 0xcc1   :  { %1436 = vadd.xlane.f32.xlu0 %v1435_v40  ;;  %v3376_v40 = vld [vmem:[%s3574_s3 + $0x70] sm:$0xff] }
 0xd3e   :  { %v1425_v43 = vpop.xlane.xlu0 %1424 }
 0xd3f   :  { %v1438_v55 = vmul.f32 0.03125, %v1425_v43 }
 0xd40   :  { %v1428_v44 = vpop.xlane.xlu1 %1427 }
 0xd41   :  { %v1443_v47 = vsub.f32 %v1418_v16, %v1438_v55  ;;  %v1439_v42 = vmul.f32 0.03125, %v1428_v44  ;;  %v1508_v44 = vsel %vm162_vm2, %v3376_v40, 0.0 }
 0xd43   :  { %v1444_v48 = vsub.f32 %v1419_v23, %v1439_v42  ;;  %v1448_v45 = vmul.f32 %v1443_v47, %v1443_v47 }
 0xd45   :  { %v1453_v57 = vsel %vm162_vm2, %v1448_v45, 0.0  ;;  %v1449_v49 = vmul.f32 %v1444_v48, %v1444_v48 }
 0xd46   :  { %1454 = vadd.xlane.f32.xlu1 %v1453_v57  ;;  %v1431_v50 = vpop.xlane.xlu0 %1430 }
 0xd47   :  { %v1440_v51 = vmul.f32 0.03125, %v1431_v50  ;;  %v1456_v53 = vsel %vm162_vm2, %v1449_v49, 0.0 }
 0xd48   :  { %1457 = vadd.xlane.f32.xlu0 %v1456_v53  ;;  %v1434_v60 = vpop.xlane.xlu1 %1433 }
 0xd49   :  { %v1445_v54 = vsub.f32 %v1420_v31, %v1440_v51  ;;  %v1441_v56 = vmul.f32 0.03125, %v1434_v60 }
 0xd4b   :  { %v1446_v15 = vsub.f32 %v1421_v35, %v1441_v56  ;;  %v1450_v58 = vmul.f32 %v1445_v54, %v1445_v54 }
 0xd4d   :  { %v1459_v59 = vsel %vm162_vm2, %v1450_v58, 0.0  ;;  %v1451_v18 = vmul.f32 %v1446_v15, %v1446_v15 }
 0xd4e   :  { %1460 = vadd.xlane.f32.xlu1 %v1459_v59  ;;  %v1437_v61 = vpop.xlane.xlu0 %1436 }
 0xd4f   :  { %v1442_v63 = vmul.f32 0.03125, %v1437_v61  ;;  %v1462_v28 = vsel %vm162_vm2, %v1451_v18, 0.0 }
 0xd50   :  { %1463 = vadd.xlane.f32.xlu0 %v1462_v28 }
 0xd51   :  { %v1447_v0 = vsub.f32 %v1422_v39, %v1442_v63 }
 0xd53   :  { %v1452_v62 = vmul.f32 %v1447_v0, %v1447_v0 }
 0xd55   :  { %v1465_v2 = vsel %vm175_vm3, %v1452_v62, 0.0 }
 0xd56   :  { %1466 = vadd.xlane.f32.xlu1 %v1465_v2 }
 0xdd3   :  { %v1455_v25 = vpop.xlane.xlu1 %1454 }
 0xdd4   :  { %v1468_v3 = vmul.f32 0.03125, %v1455_v25 }
 0xdd5   :  { %v1458_v4 = vpop.xlane.xlu0 %1457 }
 0xdd6   :  { %v1473_v52 = vadd.f32 1e-06, %v1468_v3  ;;  %v1469_v5 = vmul.f32 0.03125, %v1458_v4 }
 0xdd8   :  { %2788 = vrsqrt.f32 %v1473_v52  ;;  %v1474_v6 = vadd.f32 1e-06, %v1469_v5 }
 0xdda   :  { %2790 = vrsqrt.f32 %v1474_v6 }
 0xddb   :  { %v1461_v34 = vpop.xlane.xlu1 %1460 }
 0xddc   :  { %v1470_v7 = vmul.f32 0.03125, %v1461_v34 }
 0xddd   :  { %v1464_v8 = vpop.xlane.xlu0 %1463 }
 0xdde   :  { %v1475_v9 = vadd.f32 1e-06, %v1470_v7  ;;  %v1471_v10 = vmul.f32 0.03125, %v1464_v8 }
 0xde0   :  { %2792 = vrsqrt.f32 %v1475_v9  ;;  %v1476_v11 = vadd.f32 1e-06, %v1471_v10 }
 0xde2   :  { %v2789_v12 = vpop.eup %2788  ;;  %2794 = vrsqrt.f32 %v1476_v11 }
 0xde3   :  { %v1467_v14 = vpop.xlane.xlu1 %1466  ;;  %v1483_v16 = vmul.f32 %v2789_v12, %v1443_v47 }
 0xde4   :  { %v2791_v19 = vpop.eup %2790  ;;  %v1472_v20 = vmul.f32 0.03125, %v1467_v14 }
 0xde5   :  { %v1493_v23 = vmul.f32 %v2286_v13, %v1483_v16  ;;  %v1484_v17 = vmul.f32 %v2791_v19, %v1444_v48  ;;  %v3384_v48 = vld [vmem:[%s3574_s3 + $0x78] sm:$0xff] }
 0xde6   :  { %v1477_v22 = vadd.f32 1e-06, %v1472_v20  ;;  %v1511_v57 = vsel %vm162_vm2, %v3384_v48, 0.0 }
 0xde7   :  { %v1503_v24 = vadd.f32 %v2287_v21, %v1493_v23  ;;  %v1494_v26 = vmul.f32 %v2286_v13, %v1484_v17  ;;  %v2709_v23 = vld [vmem:[%s3572_s1 + $0x78] sm:$0xff]   ;;  %v2710_v17 = vld [vmem:[%s3572_s1 + $0x60] sm:$0xff]  }
 0xde8   :  { %2796 = vrsqrt.f32 %v1477_v22  ;;  %2605 = vmatpush3.bf16.msra.mxu0 %v2710_v17  ;;  %v2711_v22 = vld [vmem:[%s3572_s1 + $0x68] sm:$0xff]   ;;  %v2304_v17 = vld [vmem:[%s3574_s3 + $0x15] ss:$0 sm:$0xff] }
 0xde9   :  { %v1548_v27 = vsel %vm162_vm2, %v1503_v24, 0.0  ;;  %v1504_v29 = vadd.f32 %v2287_v21, %v1494_v26  ;;  %2606 = vmatprep.subr.bf16.mxu0 %v2848_v1 }
 0xdea   :  { %v2793_v30 = vpop.eup %2792  ;;  %1549 = vadd.xlane.f32.xlu0 %v1548_v27 }
 0xdeb   :  { %v1551_v31 = vsel %vm162_vm2, %v1504_v29, 0.0  ;;  %v1485_v32 = vmul.f32 %v2793_v30, %v1445_v54 }
 0xdec   :  { %v2795_v41 = vpop.eup %2794  ;;  %1552 = vadd.xlane.f32.xlu1 %v1551_v31  ;;  %2607 = vmatpush3.bf16.msra.mxu0 %v2711_v22 }
 0xded   :  { %v1495_v33 = vmul.f32 %v2286_v13, %v1485_v32  ;;  %v1486_v35 = vmul.f32 %v2795_v41, %v1446_v15  ;;  %2628 = vmatprep.subr.bf16.mxu0 %v2848_v1 }
 0xdef   :  { %v1505_v36 = vadd.f32 %v2287_v21, %v1495_v33  ;;  %v1496_v46 = vmul.f32 %v2286_v13, %v1486_v35 }
 0xdf1   :  { %v1554_v37 = vsel %vm162_vm2, %v1505_v36, 0.0  ;;  %v1506_v38 = vadd.f32 %v2287_v21, %v1496_v46 }
 0xdf2   :  { %v2797_v39 = vpop.eup %2796  ;;  %1555 = vadd.xlane.f32.xlu0 %v1554_v37 }
 0xdf3   :  { %v1557_v43 = vsel %vm162_vm2, %v1506_v38, 0.0  ;;  %v1487_v55 = vmul.f32 %v2797_v39, %v1447_v0  ;;  %v2290_v39 = vld [vmem:[%s3574_s3 + $0x12] ss:$0 sm:$0xff] }
 0xdf4   :  { %1558 = vadd.xlane.f32.xlu1 %v1557_v43 }
 0xdf5   :  { %v1497_v47 = vmul.f32 %v2286_v13, %v1487_v55 }
 0xdf7   :  { %v1507_v42 = vadd.f32 %v2287_v21, %v1497_v47  ;;  %v2708_v21 = vld [vmem:[%s3572_s1 + $0x70] sm:$0xff]  }
 0xdf8   :  { %1509 = vadd.xlane.f32.xlu1 %v1508_v44  ;;  %2613 = vmatpush3.bf16.msra.mxu1 %v2708_v21  ;;  %v2712_v21 = vld [vmem:[%s3572_s1 + $0x80] sm:$0xff]  }
 0xdf9   :  { %v1560_v45 = vsel %vm175_vm3, %v1507_v42, 0.0  ;;  %2614 = vmatprep.subr.bf16.mxu1 %v2848_v1 }
 0xdfa   :  { %1561 = vadd.xlane.f32.xlu0 %v1560_v45 }
 0xdfc   :  { %2615 = vmatpush3.bf16.msra.mxu1 %v2709_v23 }
 0xdfd   :  { %2644 = vmatprep.subr.bf16.mxu1 %v2848_v1 }
 0xdfe   :  { %1512 = vadd.xlane.f32.xlu0 %v1511_v57 }
 0xe77   :  { %v1550_v49 = vpop.xlane.xlu0 %1549 }
 0xe78   :  { %v1563_v50 = vmul.f32 0.03125, %v1550_v49 }
 0xe79   :  { %v1553_v51 = vpop.xlane.xlu1 %1552 }
 0xe7a   :  { %v3389_v53 = vsub.f32 %v1503_v24, %v1563_v50  ;;  %v1564_v60 = vmul.f32 0.03125, %v1553_v51  ;;  %v2291_v50 = vld [vmem:[%s3574_s3 + $0x13] ss:$0 sm:$0xff] }
 0xe7c   :  { %v3391_v54 = vsub.f32 %v1504_v29, %v1564_v60  ;;  %v1573_v56 = vmul.f32 %v3389_v53, %v3389_v53 }
 0xe7e   :  { %v1578_v15 = vsel %vm162_vm2, %v1573_v56, 0.0  ;;  %v1574_v58 = vmul.f32 %v3391_v54, %v3391_v54 }
 0xe7f   :  { %1579 = vadd.xlane.f32.xlu1 %v1578_v15  ;;  %v1556_v59 = vpop.xlane.xlu0 %1555 }
 0xe80   :  { %v1565_v18 = vmul.f32 0.03125, %v1556_v59  ;;  %v1581_v61 = vsel %vm162_vm2, %v1574_v58, 0.0 }
 0xe81   :  { %1582 = vadd.xlane.f32.xlu0 %v1581_v61  ;;  %v1559_v63 = vpop.xlane.xlu1 %1558 }
 0xe82   :  { %v3399_v28 = vsub.f32 %v1505_v36, %v1565_v18  ;;  %v1566_v0 = vmul.f32 0.03125, %v1559_v63 }
 0xe84   :  { %v3401_v62 = vsub.f32 %v1506_v38, %v1566_v0  ;;  %v1575_v2 = vmul.f32 %v3399_v28, %v3399_v28 }
 0xe85   :  { %v1510_v25 = vpop.xlane.xlu1 %1509 }
 0xe86   :  { %v1514_v3 = vmul.f32 0.03125, %v1510_v25  ;;  %v1584_v4 = vsel %vm162_vm2, %v1575_v2, 0.0  ;;  %v1576_v52 = vmul.f32 %v3401_v62, %v3401_v62 }
 0xe87   :  { %1585 = vadd.xlane.f32.xlu1 %v1584_v4  ;;  %v1562_v5 = vpop.xlane.xlu0 %1561 }
 0xe88   :  { %v3409_v6 = vsub.f32 %v3376_v40, %v1514_v3  ;;  %v1567_v34 = vmul.f32 0.03125, %v1562_v5  ;;  %v1587_v7 = vsel %vm162_vm2, %v1576_v52, 0.0 }
 0xe89   :  { %1588 = vadd.xlane.f32.xlu0 %v1587_v7 }
 0xe8a   :  { %v3412_v8 = vsub.f32 %v1507_v42, %v1567_v34  ;;  %v1518_v9 = vmul.f32 %v3409_v6, %v3409_v6 }
 0xe8b   :  { %v1513_v10 = vpop.xlane.xlu0 %1512 }
 0xe8c   :  { %v1515_v11 = vmul.f32 0.03125, %v1513_v10  ;;  %v1520_v12 = vsel %vm162_vm2, %v1518_v9, 0.0  ;;  %v1577_v13 = vmul.f32 %v3412_v8, %v3412_v8 }
 0xe8d   :  { %1521 = vadd.xlane.f32.xlu0 %v1520_v12 }
 0xe8e   :  { %v3420_v14 = vsub.f32 %v3384_v48, %v1515_v11  ;;  %v1590_v16 = vsel %vm175_vm3, %v1577_v13, 0.0 }
 0xe8f   :  { %1591 = vadd.xlane.f32.xlu1 %v1590_v16 }
 0xe90   :  { %v1519_v19 = vmul.f32 %v3420_v14, %v3420_v14 }
 0xe92   :  { %v1523_v20 = vsel %vm162_vm2, %v1519_v19, 0.0 }
 0xe93   :  { %1524 = vadd.xlane.f32.xlu1 %v1523_v20 }
 0xf0c   :  { %v1580_v24 = vpop.xlane.xlu1 %1579 }
 0xf0d   :  { %v1593_v26 = vmul.f32 0.03125, %v1580_v24 }
 0xf0e   :  { %v1583_v27 = vpop.xlane.xlu0 %1582 }
 0xf0f   :  { %v1598_v29 = vadd.f32 1e-06, %v1593_v26  ;;  %v1594_v30 = vmul.f32 0.03125, %v1583_v27 }
 0xf11   :  { %2798 = vrsqrt.f32 %v1598_v29  ;;  %v1599_v31 = vadd.f32 1e-06, %v1594_v30 }
 0xf13   :  { %2800 = vrsqrt.f32 %v1599_v31 }
 0xf14   :  { %v1586_v32 = vpop.xlane.xlu1 %1585 }
 0xf15   :  { %v1595_v41 = vmul.f32 0.03125, %v1586_v32 }
 0xf16   :  { %v1589_v33 = vpop.xlane.xlu0 %1588 }
 0xf17   :  { %v1600_v35 = vadd.f32 1e-06, %v1595_v41  ;;  %v1596_v36 = vmul.f32 0.03125, %v1589_v33 }
 0xf19   :  { %2802 = vrsqrt.f32 %v1600_v35  ;;  %v1601_v46 = vadd.f32 1e-06, %v1596_v36 }
 0xf1a   :  { %v1522_v37 = vpop.xlane.xlu0 %1521 }
 0xf1b   :  { %v2799_v38 = vpop.eup %2798  ;;  %2804 = vrsqrt.f32 %v1601_v46  ;;  %v1526_v43 = vmul.f32 0.03125, %v1522_v37 }
 0xf1c   :  { %v1608_v55 = vmul.f32 %v2799_v38, %v3389_v53  ;;  %v1592_v44 = vpop.xlane.xlu1 %1591 }
 0xf1d   :  { %v2801_v47 = vpop.eup %2800  ;;  %v1528_v42 = vadd.f32 1e-06, %v1526_v43  ;;  %v1597_v45 = vmul.f32 0.03125, %v1592_v44 }
 0xf1e   :  { %v1618_v57 = vmul.f32 %v2290_v39, %v1608_v55  ;;  %v1609_v49 = vmul.f32 %v2801_v47, %v3391_v54  ;;  %v2296_v47 = vld [vmem:[%s3574_s3 + $0x14] ss:$0 sm:$0xff] }
 0xf1f   :  { %2806 = vrsqrt.f32 %v1528_v42  ;;  %v1602_v51 = vadd.f32 1e-06, %v1597_v45 }
 0xf20   :  { %v1619_v60 = vmul.f32 %v2290_v39, %v1609_v49  ;;  %v1525_v56 = vpop.xlane.xlu1 %1524  ;;  %v1628_v58 = vadd.f32 %v2291_v50, %v1618_v57 }
 0xf21   :  { %2808 = vrsqrt.f32 %v1602_v51  ;;  %v1527_v15 = vmul.f32 0.03125, %v1525_v56 }
 0xf22   :  { %v1629_v59 = vadd.f32 %v2291_v50, %v1619_v60 }
 0xf23   :  { %v2803_v53 = vpop.eup %2802  ;;  %v1529_v18 = vadd.f32 1e-06, %v1527_v15 }
 0xf24   :  { %v1610_v61 = vmul.f32 %v2803_v53, %v3399_v28  ;;  %v1633_v63 = vpack.c.bf16 %v1629_v59, %v1628_v58  ;;  %v2314_v53 = vld [vmem:[%s3574_s3 + $0x16] ss:$0 sm:$0xff] }
 0xf25   :  { %v2805_v0 = vpop.eup %2804  ;;  %2810 = vrsqrt.f32 %v1529_v18 }
 0xf26   :  { %v1611_v54 = vmul.f32 %v2805_v0, %v3401_v62  ;;  %2617 = vmatmul.mubr.msk.bf16.vlgmr.msra.gmra.mrb[60].mxu1 %vm162_vm2, %v1633_v63  ;;  %v1620_v2 = vmul.f32 %v2290_v39, %v1610_v61  ;;  %v2288_v62 = vld [vmem:[%s3574_s3 + $0x10] ss:$0 sm:$0xff] }
 0xf27   :  { %2620 = vmatprep.mubr.msk.bf16.mxu1 %vm2849_vm0, %v2848_v1 }
 0xf28   :  { %v1621_v25 = vmul.f32 %v2290_v39, %v1611_v54  ;;  %v1630_v4 = vadd.f32 %v2291_v50, %v1620_v2 }
 0xf29   :  { %v2807_v3 = vpop.eup %2806 }
 0xf2a   :  { %v1631_v52 = vadd.f32 %v2291_v50, %v1621_v25  ;;  %v1532_v34 = vmul.f32 %v2807_v3, %v3409_v6  ;;  %v2289_v6 = vld [vmem:[%s3574_s3 + $0x11] ss:$0 sm:$0xff] }
 0xf2b   :  { %v2809_v5 = vpop.eup %2808 }
 0xf2c   :  { %v1634_v7 = vpack.c.bf16 %v1631_v52, %v1630_v4  ;;  %v1612_v28 = vmul.f32 %v2809_v5, %v3412_v8  ;;  %v1539_v11 = vmul.f32 %v2288_v62, %v1532_v34 }
 0xf2e   :  { %2621 = vmatmul.mubr.msk.bf16.gmra.mrb[64].mxu1 %vm162_vm2, %v1634_v7  ;;  %v1622_v9 = vmul.f32 %v2290_v39, %v1612_v28  ;;  %v1546_v16 = vadd.f32 %v2289_v6, %v1539_v11 }
 0xf2f   :  { %v2811_v10 = vpop.eup %2810  ;;  %2624 = vmatprep.mubr.msk.bf16.mxu1 %vm2849_vm0, %v2848_v1 }
 0xf30   :  { %v1533_v12 = vmul.f32 %v2811_v10, %v3420_v14  ;;  %v1632_v13 = vadd.f32 %v2291_v50, %v1622_v9  ;;  %v2713_v14 = vld [vmem:[%s3572_s1 + $0x88] sm:$0xff]  }
 0xf32   :  { %v1540_v8 = vmul.f32 %v2288_v62, %v1533_v12  ;;  %v1635_v20 = vpack.c.bf16 %v1632_v13, %v1632_v13 }
 0xf34   :  { %v1547_v19 = vadd.f32 %v2289_v6, %v1540_v8 }
 0xf36   :  { %2625 = vmatmul.mubr.msk.bf16.gmra.mrb[68].mxu1 %vm162_vm2, %v1635_v20  ;;  %v1642_v23 = vpack.c.bf16 %v1547_v19, %v1546_v16  ;;  %v32_v16 = vld [vmem:[%s3576_s5 + $0x28] sm:$0xff] }
 0xf37   :  { %2650 = vmatprep.mubr.msk.bf16.mxu1 %vm2849_vm0, %v2848_v1 }
 0xf38   :  { %2609 = vmatmul.mubr.msk.bf16.vlgmr.msra.gmra.mrb[60].mxu0 %vm162_vm2, %v1642_v23  ;;  %v33_v23 = vld [vmem:[%s3576_s5 + $0x30] sm:$0xff] }
 0xf39   :  { %2629 = vmatpush3.bf16.msra.mxu0 %v2712_v21  ;;  %2632 = vmatprep.mubr.msk.bf16.mxu0 %vm2849_vm0, %v2848_v1 }
 0xf3a   :  { %2630 = vmatprep.subr.bf16.mxu0 %v2848_v1 }
 0xf3d   :  { %2631 = vmatpush3.bf16.msra.mxu0 %v2713_v14 }
 0xf3e   :  { %2654 = vmatprep.subr.bf16.mxu0 %v2848_v1 }
 0xf40   :  { %2633 = vmatmul.mubr.msk.bf16.vlgmr.msra.gmra.mrb[64].mxu0 %vm162_vm2, %v1633_v63 }
 0xf41   :  { %2636 = vmatprep.mubr.msk.bf16.mxu0 %vm2849_vm0, %v2848_v1 }
 0xf48   :  { %2637 = vmatmul.mubr.msk.bf16.gmra.mrb[68].mxu0 %vm162_vm2, %v1634_v7 }
 0xf49   :  { %2640 = vmatprep.mubr.msk.bf16.mxu0 %vm2849_vm0, %v2848_v1 }
 0xf50   :  { %2641 = vmatmul.mubr.msk.bf16.gmra.mrb[72].mxu0 %vm162_vm2, %v1635_v20 }
 0xf51   :  { %2660 = vmatprep.mubr.msk.bf16.mxu0 %vm2849_vm0, %v2848_v1 }
 0xff9   :  { %v1768_v22 = vpop.f32.mrb[60].mxu1 }
 0xffa   :  { %v2618_v24 = vpop.f32.mrb[61].mxu1  ;;  %v1769_v27 = vadd.f32 %v2304_v17, %v1768_v22 }
 0xffb   :  { %v1771_v26 = vpop.f32.mrb[62].mxu1 }
 0xffc   :  { %v1772_v29 = vadd.f32 %v2304_v17, %v1771_v26  ;;  %v2619_v30 = vpop.f32.mrb[63].mxu1 }
 0xffe   :  { %v1869_v31 = vpack.c.bf16 %v1772_v29, %v1769_v27 }
0x1000   :  { %v1879_v32 = vsel %vm162_vm2, %v1869_v31, 0 }
0x1001   :  { %v1776_v41 = vpop.f32.mrb[64].mxu1  ;;  %2645 = vmatpush3.bf16.xpose.msra.mxu1 %v1879_v32 }
0x1002   :  { %v2622_v33 = vpop.f32.mrb[65].mxu1  ;;  %2646 = vmatprep.subr.bf16.mxu1 %v2848_v1  ;;  %v1777_v36 = vadd.f32 %v2304_v17, %v1776_v41 }
0x1003   :  { %v1779_v35 = vpop.f32.mrb[66].mxu1 }
0x1004   :  { %v1780_v46 = vadd.f32 %v2304_v17, %v1779_v35  ;;  %v2623_v37 = vpop.f32.mrb[67].mxu1 }
0x1006   :  { %v1870_v38 = vpack.c.bf16 %v1780_v46, %v1777_v36 }
0x1008   :  { %v1882_v39 = vsel %vm162_vm2, %v1870_v38, 0 }
0x1009   :  { %v1784_v43 = vpop.f32.mrb[68].mxu1  ;;  %2647 = vmatpush3.bf16.xpose.msra.mxu1 %v1882_v39  ;;  %v2714_v39 = vld [vmem:[%s3572_s1 + $0x90] sm:$0xff]  }
0x100a   :  { %v1785_v55 = vadd.f32 %v2304_v17, %v1784_v43  ;;  %v2626_v44 = vpop.f32.mrb[69].mxu1  ;;  %2648 = vmatprep.subr.bf16.mxu1 %v2848_v1  ;;  %v2715_v43 = vld [vmem:[%s3572_s1 + $0x98] sm:$0xff]  }
0x100b   :  { %v1696_v42 = vpop.f32.mrb[60].mxu0  ;;  %v1787_v45 = vpop.f32.mrb[70].mxu1 }
0x100c   :  { %v1871_v57 = vpack.c.bf16 %v1785_v55, %v1785_v55  ;;  %v2610_v49 = vpop.f32.mrb[61].mxu0  ;;  %v2627_v50 = vpop.f32.mrb[71].mxu1  ;;  %v1697_v60 = vadd.f32 %v2296_v47, %v1696_v42 }
0x100d   :  { %v1699_v51 = vpop.f32.mrb[62].mxu0 }
0x100e   :  { %v1700_v56 = vadd.f32 %v2296_v47, %v1699_v51  ;;  %v2611_v15 = vpop.f32.mrb[63].mxu0  ;;  %v1885_v58 = vsel %vm162_vm2, %v1871_v57, 0 }
0x100f   :  { %v2326_v15 = vld [vmem:[%s3574_s3 + $0x17] ss:$0 sm:$0xff] }
0x1010   :  { %v1868_v59 = vpack.c.bf16 %v1700_v56, %v1697_v60 }
0x1011   :  { %2649 = vmatpush3.bf16.xpose.msra.mxu1 %v1885_v58 }
0x1012   :  { %2664 = vmatprep.subr.bf16.mxu1 %v2848_v1 }
0x1013   :  { %v1846_v18 = vpop.f32.mrb[64].mxu0 }
0x1014   :  { %v2634_v61 = vpop.f32.mrb[65].mxu0  ;;  %v1847_v0 = vadd.f32 %v2314_v53, %v1846_v18 }
0x1015   :  { %v1849_v63 = vpop.f32.mrb[66].mxu0 }
0x1016   :  { %v1850_v54 = vadd.f32 %v2314_v53, %v1849_v63  ;;  %v2635_v2 = vpop.f32.mrb[67].mxu0 }
0x1018   :  { %v1872_v25 = vpack.c.bf16 %v1850_v54, %v1847_v0  ;;  %2651 = vmatmul.mubr.msk.bf16.vlgmr.msra.gmra.mrb[72].mxu1 %vm162_vm2, %v1868_v59 }
0x1019   :  { %2668 = vmatprep.mubr.msk.bf16.mxu1 %vm2849_vm0, %v2848_v1  ;;  %2665 = vmatpush3.bf16.msra.mxu1 %v2714_v39 }
0x101a   :  { %2655 = vmatpush3.bf16.msra.mxu0 %v1872_v25  ;;  %2666 = vmatprep.subr.bf16.mxu1 %v2848_v1 }
0x101b   :  { %v1854_v3 = vpop.f32.mrb[68].mxu0  ;;  %2656 = vmatprep.subr.bf16.mxu0 %v2848_v1 }
0x101c   :  { %v2638_v4 = vpop.f32.mrb[69].mxu0  ;;  %v1855_v5 = vadd.f32 %v2314_v53, %v1854_v3 }
0x101d   :  { %v1857_v52 = vpop.f32.mrb[70].mxu0  ;;  %2667 = vmatpush3.bf16.msra.mxu1 %v2715_v43 }
0x101e   :  { %v1858_v34 = vadd.f32 %v2314_v53, %v1857_v52  ;;  %v2639_v7 = vpop.f32.mrb[71].mxu0 }
0x1020   :  { %v1873_v28 = vpack.c.bf16 %v1858_v34, %v1855_v5 }
0x1022   :  { %2657 = vmatpush3.bf16.msra.mxu0 %v1873_v28 }
0x1023   :  { %v1862_v62 = vpop.f32.mrb[72].mxu0  ;;  %2658 = vmatprep.subr.bf16.mxu0 %v2848_v1 }
0x1024   :  { %v1863_v9 = vadd.f32 %v2314_v53, %v1862_v62  ;;  %v2642_v10 = vpop.f32.mrb[73].mxu0 }
0x1025   :  { %v1865_v11 = vpop.f32.mrb[74].mxu0  ;;  %v2717_v10 = vld [vmem:[%s3572_s1 + $0xa8] sm:$0xff]  }
0x1026   :  { %v1874_v12 = vpack.c.bf16 %v1863_v9, %v1863_v9  ;;  %v2643_v13 = vpop.f32.mrb[75].mxu0 }
0x1028   :  { %v1955_v6 = vsel %vm647_vm4, %v1874_v12, 0 }
0x1029   :  { %2659 = vmatpush3.bf16.msra.mxu0 %v1955_v6 }
0x102a   :  { %2672 = vmatprep.subr.bf16.mxu0 %v2848_v1 }
0x10eb   :  { %v1921_v8 = vpop.f32.mrb[72].mxu1 }
0x10ec   :  { %v1928_v19 = vmul.f32 0.17677669, %v1921_v8  ;;  %v2652_v20 = vpop.f32.mrb[73].mxu1 }
0x10ed   :  { %v1924_v21 = vpop.f32.mrb[74].mxu1  ;;  %v2330_v20 = vld [vmem:[%s3574_s3 + $0x18] ss:$0 sm:$0xff] }
0x10ee   :  { %v1929_v14 = vmul.f32 0.17677669, %v1924_v21  ;;  %v2653_v17 = vpop.f32.mrb[75].mxu1  ;;  %v1930_v22 = vadd.f32 %v1928_v19, %v32_v16 }
0x10ef   :  { %v2331_v17 = vld [vmem:[%s3574_s3 + $0x19] ss:$0 sm:$0xff]  ;;  %s2824_s3 = scalar_lea.vmem %s2189_s28, 256 }
0x10f0   :  { %v1932_v24 = vsel %vm588_vm5, %v1930_v22, -inf  ;;  %v1931_v26 = vadd.f32 %v1929_v14, %v33_v23  ;;  %p2825_p0 = scmp.ne.s32.totalorder %s2189_s28, %s2824_s3  ;;  %p2830_p2 = scmp.lt.s32.totalorder %s2824_s3, %s2824_s3 }
0x10f1   :  { %1933 = vmax.xlane.f32.xlu0 %v1932_v24 }
0x10f2   :  { %v1935_v27 = vsel %vm588_vm5, %v1931_v26, -inf  ;;  %p2831_p3 = por %p2830_p2, %p2829_p1 }
0x10f3   :  { %1936 = vmax.xlane.f32.xlu1 %v1935_v27 }
0x10f4   :  { %p2832_p4 = pnand %p2831_p3, %p2825_p0 }
0x117e   :  { %v1934_v29 = vpop.xlane.xlu0 %1933 }
0x117f   :  { %v1938_v30 = vsub.f32 %v1930_v22, %v1934_v29  ;;  %v2336_v29 = vld [vmem:[%s3575_s4 + $0x1] ss:$0 sm:$0xff] }
0x1180   :  { %v1937_v31 = vpop.xlane.xlu1 %1936 }
0x1181   :  { %v1940_v32 = vmul.f32 1.442695, %v1938_v30  ;;  %v1939_v41 = vsub.f32 %v1931_v26, %v1937_v31 }
0x1183   :  { %2812 = vpow2.f32 %v1940_v32  ;;  %v1942_v33 = vmul.f32 1.442695, %v1939_v41 }
0x1185   :  { %2814 = vpow2.f32 %v1942_v33 }
0x118d   :  { %v2813_v35 = vpop.eup %2812 }
0x118e   :  { %v1944_v36 = vsel %vm588_vm5, %v2813_v35, 0.0 }
0x118f   :  { %v2815_v46 = vpop.eup %2814  ;;  %1945 = vadd.xlane.f32.xlu0 %v1944_v36 }
0x1190   :  { %v1950_v37 = vpack.c.bf16 %v2815_v46, %v2813_v35  ;;  %v1947_v38 = vsel %vm588_vm5, %v2815_v46, 0.0 }
0x1191   :  { %1948 = vadd.xlane.f32.xlu1 %v1947_v38 }
0x1192   :  { %2661 = vmatmul.mubr.msk.bf16.vlgmr.msra.gmra.mrb[76].mxu0 %vm588_vm5, %v1950_v37 }
0x1193   :  { %2676 = vmatprep.mubr.msk.bf16.mxu0 %vm2849_vm0, %v2848_v1 }
0x121c   :  { %v1946_v55 = vpop.xlane.xlu0 %1945 }
0x121d   :  { %2816 = vrcp.f32 %v1946_v55 }
0x121e   :  { %v1949_v44 = vpop.xlane.xlu1 %1948 }
0x121f   :  { %2818 = vrcp.f32 %v1949_v44 }
0x1227   :  { %v2817_v42 = vpop.eup %2816 }
0x1229   :  { %v2819_v57 = vpop.eup %2818 }
0x1265   :  { %v1991_v47 = vpop.f32.mrb[76].mxu0 }
0x1266   :  { %v2662_v45 = vpop.f32.mrb[77].mxu0  ;;  %v2000_v50 = vmul.f32 %v2817_v42, %v1991_v47 }
0x1267   :  { %v1994_v49 = vpop.f32.mrb[78].mxu0 }
0x1268   :  { %v2001_v51 = vmul.f32 %v2819_v57, %v1994_v49  ;;  %v2663_v60 = vpop.f32.mrb[79].mxu0 }
0x126a   :  { %v2008_v56 = vpack.c.bf16 %v2001_v51, %v2000_v50 }
0x126c   :  { %2669 = vmatmul.mubr.msk.bf16.vlgmr.msra.gmra.mrb[76].mxu1 %vm162_vm2, %v2008_v56 }
0x133f   :  { %v2062_v58 = vpop.f32.mrb[76].mxu1 }
0x1340   :  { %v2063_v59 = vadd.f32 %v2326_v15, %v2062_v58  ;;  %v2670_v53 = vpop.f32.mrb[77].mxu1 }
0x1341   :  { %v2065_v18 = vpop.f32.mrb[78].mxu1 }
0x1342   :  { %v2066_v61 = vadd.f32 %v2326_v15, %v2065_v18  ;;  %v2671_v63 = vpop.f32.mrb[79].mxu1  ;;  %v2069_v0 = vadd.f32 %v2063_v59, %v3376_v40 }
0x1344   :  { %v2071_v54 = vsel %vm162_vm2, %v2069_v0, 0.0  ;;  %v2070_v2 = vadd.f32 %v2066_v61, %v3384_v48  ;;  %v2716_v48 = vld [vmem:[%s3572_s1 + $0xa0] sm:$0xff]  }
0x1345   :  { %2072 = vadd.xlane.f32.xlu0 %v2071_v54  ;;  %2673 = vmatpush3.bf16.msra.mxu0 %v2716_v48 }
0x1346   :  { %v2074_v25 = vsel %vm162_vm2, %v2070_v2, 0.0  ;;  %2674 = vmatprep.subr.bf16.mxu0 %v2848_v1 }
0x1347   :  { %2075 = vadd.xlane.f32.xlu1 %v2074_v25 }
0x1349   :  { %2675 = vmatpush3.bf16.msra.mxu0 %v2717_v10 }
0x13d2   :  { %v2073_v3 = vpop.xlane.xlu0 %2072 }
0x13d3   :  { %v2077_v4 = vmul.f32 0.03125, %v2073_v3 }
0x13d4   :  { %v2076_v52 = vpop.xlane.xlu1 %2075 }
0x13d5   :  { %v2079_v5 = vsub.f32 %v2069_v0, %v2077_v4  ;;  %v2078_v34 = vmul.f32 0.03125, %v2076_v52 }
0x13d7   :  { %v2080_v7 = vsub.f32 %v2070_v2, %v2078_v34  ;;  %v2081_v28 = vmul.f32 %v2079_v5, %v2079_v5 }
0x13d9   :  { %v2083_v62 = vsel %vm162_vm2, %v2081_v28, 0.0  ;;  %v2082_v9 = vmul.f32 %v2080_v7, %v2080_v7 }
0x13da   :  { %2084 = vadd.xlane.f32.xlu0 %v2083_v62 }
0x13db   :  { %v2086_v40 = vsel %vm162_vm2, %v2082_v9, 0.0 }
0x13dc   :  { %2087 = vadd.xlane.f32.xlu1 %v2086_v40 }
0x1467   :  { %v2085_v11 = vpop.xlane.xlu0 %2084 }
0x1468   :  { %v2089_v12 = vmul.f32 0.03125, %v2085_v11 }
0x1469   :  { %v2088_v13 = vpop.xlane.xlu1 %2087 }
0x146a   :  { %v2091_v6 = vadd.f32 1e-06, %v2089_v12  ;;  %v2090_v8 = vmul.f32 0.03125, %v2088_v13 }
0x146c   :  { %2820 = vrsqrt.f32 %v2091_v6  ;;  %v2092_v16 = vadd.f32 1e-06, %v2090_v8 }
0x146e   :  { %2822 = vrsqrt.f32 %v2092_v16 }
0x1476   :  { %v2821_v19 = vpop.eup %2820 }
0x1477   :  { %v2095_v21 = vmul.f32 %v2821_v19, %v2079_v5 }
0x1478   :  { %v2823_v1 = vpop.eup %2822 }
0x1479   :  { %v2102_v23 = vmul.f32 %v2330_v20, %v2095_v21  ;;  %v2096_v14 = vmul.f32 %v2823_v1, %v2080_v7 }
0x147b   :  { %v2103_v22 = vmul.f32 %v2330_v20, %v2096_v14  ;;  %v2109_v24 = vadd.f32 %v2331_v17, %v2102_v23 }
0x147d   :  { %v2110_v26 = vadd.f32 %v2331_v17, %v2103_v22 }
0x147f   :  { %v2116_v27 = vpack.c.bf16 %v2110_v26, %v2109_v24 }
0x1481   :  { %2677 = vmatmul.mubr.msk.bf16.vlgmr.msra.gmra.mrb[80].mxu0 %vm162_vm2, %v2116_v27 }
0x1554   :  { %v2170_v30 = vpop.f32.mrb[80].mxu0 }
0x1555   :  { %v2171_v31 = vadd.f32 %v2336_v29, %v2170_v30  ;;  %v2678_v32 = vpop.f32.mrb[81].mxu0 }
0x1556   :  { %v2173_v41 = vpop.f32.mrb[82].mxu0 }
0x1557   :  { %2178 = vst.msk [vmem:[#allocation2] sm:$0xff] %vm2177_vm7, %v2171_v31  ;;  %v2174_v33 = vadd.f32 %v2336_v29, %v2173_v41  ;;  %v2679_v35 = vpop.f32.mrb[83].mxu0 }
0x1559   :  { %2180 = vst.msk [vmem:[#allocation2 + $0x8] sm:$0xff] %vm2177_vm7, %v2174_v33 }
0x155a   :  { %2835 = shalt.err (!%p2832_p4)
}
0x155b   :  { %s2836_s30 = scalar_lea.hbm %s3578_s7, 256 }
0x155c   :  { %p2837_p5 = scmp.ne.s32.totalorder %s3578_s7, %s2836_s30  ;;  %p2840_p6 = scmp.lt.u32.totalorder %s2836_s30, %s3578_s7 }
0x155e   :  { %p2842_p7 = pnand %p2840_p6, %p2837_p5 }
0x1560   :  { %2845 = shalt.err (!%p2842_p7)
}
0x1561   :  { %s2851_s12 = smov 128   ;;  %s2852_s13 = smov 8  }
0x1562   :  { %2194 = dma.vmem_to_hbm [thread:$0]  %s2189_s28, 256, %s3578_s7, [#allocation3], %s2851_s12, %s2851_s12, %s2852_s13  }
0x1563   :  { %2846 = dma.done.wait [#allocation3], 256  }
0x1564   :  { %2847 = vsyncadd [#allocation3], 4294967040 }
0x1565   :  { %2200 = vsyncpa [#allocation3], 1 }

</bundles_post_ra>
